<compile_context>
chip_gen: v6e
topology: v6e:2x2x1
jax: 0.10.0
libtpu: 0.0.40
codegen_flags: <defaults>
</compile_context>

<pallas_src>
import jax
import jax.numpy as jnp
from jax.experimental import pallas as pl
from jax.experimental.pallas import tpu as pltpu


# ----------------------------------------------------------------------------
# Fused VAE forward kernel.  All operands are whole-array VMEM refs.
# ----------------------------------------------------------------------------
def _vae_fused_kernel(
    x_ref, eps_ref,
    w_e1, b_e1, w_e2, b_e2,
    w_mu, b_mu, w_var, b_var,
    w_d1, b_d1, w_d2, b_d2, w_d3, b_d3,
    recon_ref, mu_ref, var_ref,
):
    def dense(h, w_ref, b_ref, act=None):
        # y = h @ W + b  (W stored as (in, out), so this equals x @ W_pt.T)
        y = jnp.dot(h, w_ref[...], preferred_element_type=jnp.float32) + b_ref[...]
        if act == "relu":
            y = jnp.maximum(y, 0.0)
        elif act == "sigmoid":
            y = jax.nn.sigmoid(y)
        return y

    x = x_ref[...]

    # Encoder: Linear -> ReLU -> Dropout(id) -> Linear -> ReLU -> Dropout(id)
    h = dense(x, w_e1, b_e1, "relu")
    h = dense(h, w_e2, b_e2, "relu")

    # Latent heads (share the VMEM-resident hidden activation).
    mu = dense(h, w_mu, b_mu, None)
    var = dense(h, w_var, b_var, "sigmoid")

    # Reparameterize: Normal(mu, exp(0.5*var)).rsample() == mu + exp(0.5*var)*eps
    sample = mu + jnp.exp(0.5 * var) * eps_ref[...]

    # Decoder: Linear -> ReLU -> Dropout(id) -> Linear -> ReLU -> Dropout(id)
    #          -> Linear -> ReLU
    d = dense(sample, w_d1, b_d1, "relu")
    d = dense(d, w_d2, b_d2, "relu")
    d = dense(d, w_d3, b_d3, "relu")

    recon_ref[...] = d.astype(recon_ref.dtype)
    mu_ref[...] = mu.astype(mu_ref.dtype)
    var_ref[...] = var.astype(var_ref.dtype)


def vae_forward(params, x, eps):
    """Single fused pallas_call for the whole VAE forward.

    x:   (M, input_sz)      f32
    eps: (M, compressed_sz) f32  — standard-normal noise for rsample()
    returns (recon, mu, var)
    """
    M, input_sz = x.shape
    compressed_sz = eps.shape[1]

    args = [x, eps]
    for name in ("enc1", "enc2", "mu", "var", "dec1", "dec2", "dec3"):
        w, b = params[name]
        args.append(w)                      # (in, out)
        args.append(b.reshape(1, -1))       # (1, out) — broadcast row

    out_shapes = (
        jax.ShapeDtypeStruct((M, input_sz), jnp.float32),       # recon
        jax.ShapeDtypeStruct((M, compressed_sz), jnp.float32),  # mu
        jax.ShapeDtypeStruct((M, compressed_sz), jnp.float32),  # var
    )

    # No grid / no BlockSpecs: whole arrays are DMA'd into VMEM once (total
    # working set is a few MiB — far under the scoped VMEM limit on every
    # generation, including v7x).
    return pl.pallas_call(
        _vae_fused_kernel,
        out_shape=out_shapes,
        compiler_params=pltpu.CompilerParams(vmem_limit_bytes=32 * 1024 * 1024),
    )(*args)


# ----------------------------------------------------------------------------
# Parameter construction
# ----------------------------------------------------------------------------
def init_linear_params(key, in_f, out_f):
    kw, kb = jax.random.split(key)
    bound = 1.0 / jnp.sqrt(jnp.float32(in_f))
    # Stored as (in, out) so the kernel computes x @ W (== x @ W_pt.T).
    w = jax.random.uniform(kw, (in_f, out_f), jnp.float32, -bound, bound)
    b = jax.random.uniform(kb, (out_f,), jnp.float32, -bound, bound)
    return w, b


def init_vae_params(key, input_sz, compressed_sz, layer1_sz, layer2_sz):
    keys = jax.random.split(key, 7)
    return {
        "enc1": init_linear_params(keys[0], input_sz, layer1_sz),
        "enc2": init_linear_params(keys[1], layer1_sz, layer2_sz),
        "mu": init_linear_params(keys[2], layer2_sz, compressed_sz),
        "var": init_linear_params(keys[3], layer2_sz, compressed_sz),
        "dec1": init_linear_params(keys[4], compressed_sz, layer2_sz),
        "dec2": init_linear_params(keys[5], layer2_sz, layer1_sz),
        "dec3": init_linear_params(keys[6], layer1_sz, input_sz),
    }


if __name__ == "__main__":
    # Small shapes consistent with the module (layer1 > layer2 > compressed).
    BATCH = 8
    INPUT_SZ = 256
    LAYER1_SZ = 512
    LAYER2_SZ = 256
    COMPRESSED_SZ = 128

    root = jax.random.PRNGKey(0)
    k_param, k_x, k_eps = jax.random.split(root, 3)

    params = init_vae_params(k_param, INPUT_SZ, COMPRESSED_SZ, LAYER1_SZ, LAYER2_SZ)
    x = jax.random.normal(k_x, (BATCH, INPUT_SZ), jnp.float32)
    # Deterministic standard-normal noise for rsample().
    eps = jax.random.normal(k_eps, (BATCH, COMPRESSED_SZ), jnp.float32)

    recon, mu, var = jax.jit(vae_forward)(params, x, eps)
    jax.block_until_ready((recon, mu, var))

    assert recon.shape == (BATCH, INPUT_SZ)
    assert mu.shape == (BATCH, COMPRESSED_SZ)
    assert var.shape == (BATCH, COMPRESSED_SZ)
    assert bool(jnp.all(recon >= 0.0))          # decoder ends in ReLU
    assert bool(jnp.all((var > 0.0) & (var < 1.0)))  # sigmoid head

    print("KERNEL_OK")
</pallas_src>

<mosaic_0001>
module attributes {stable_mosaic.version = 11 : i64} {
  func.func @_vae_fused_kernel(%arg0: memref<8x256xf32, #tpu.memory_space<vmem>>, %arg1: memref<8x128xf32, #tpu.memory_space<vmem>>, %arg2: memref<256x512xf32, #tpu.memory_space<vmem>>, %arg3: memref<1x512xf32, #tpu.memory_space<vmem>>, %arg4: memref<512x256xf32, #tpu.memory_space<vmem>>, %arg5: memref<1x256xf32, #tpu.memory_space<vmem>>, %arg6: memref<256x128xf32, #tpu.memory_space<vmem>>, %arg7: memref<1x128xf32, #tpu.memory_space<vmem>>, %arg8: memref<256x128xf32, #tpu.memory_space<vmem>>, %arg9: memref<1x128xf32, #tpu.memory_space<vmem>>, %arg10: memref<128x256xf32, #tpu.memory_space<vmem>>, %arg11: memref<1x256xf32, #tpu.memory_space<vmem>>, %arg12: memref<256x512xf32, #tpu.memory_space<vmem>>, %arg13: memref<1x512xf32, #tpu.memory_space<vmem>>, %arg14: memref<512x256xf32, #tpu.memory_space<vmem>>, %arg15: memref<1x256xf32, #tpu.memory_space<vmem>>, %arg16: memref<8x256xf32, #tpu.memory_space<vmem>>, %arg17: memref<8x128xf32, #tpu.memory_space<vmem>>, %arg18: memref<8x128xf32, #tpu.memory_space<vmem>>) attributes {dimension_semantics = [], scalar_prefetch = 0 : i64, scratch_operands = 0 : i64, tpu.core_type = #tpu.core_type<tc>} {
    %c0 = arith.constant 0 : index
    %c0_0 = arith.constant 0 : index
    %0 = vector.load %arg0[%c0, %c0_0] : memref<8x256xf32, #tpu.memory_space<vmem>>, vector<8x256xf32>
    %c0_1 = arith.constant 0 : index
    %c0_2 = arith.constant 0 : index
    %1 = vector.load %arg2[%c0_1, %c0_2] : memref<256x512xf32, #tpu.memory_space<vmem>>, vector<256x512xf32>
    %cst = arith.constant dense<0.000000e+00> : vector<8x512xf32>
    %2 = tpu.matmul %0, %1, %cst {dimension_numbers = #tpu.dot_dimension_numbers<[1], [0], [0], [1], [0, 0, 1, 1], [], []>} : vector<8x256xf32>, vector<256x512xf32>, vector<8x512xf32> -> vector<8x512xf32>
    %c0_3 = arith.constant 0 : index
    %c0_4 = arith.constant 0 : index
    %3 = vector.load %arg3[%c0_3, %c0_4] : memref<1x512xf32, #tpu.memory_space<vmem>>, vector<1x512xf32>
    %4 = vector.broadcast %3 : vector<1x512xf32> to vector<8x512xf32>
    %5 = arith.addf %2, %4 : vector<8x512xf32>
    %cst_5 = arith.constant 0.000000e+00 : f32
    %6 = vector.broadcast %cst_5 : f32 to vector<8x512xf32>
    %7 = arith.maximumf %5, %6 : vector<8x512xf32>
    %c0_6 = arith.constant 0 : index
    %c0_7 = arith.constant 0 : index
    %8 = vector.load %arg4[%c0_6, %c0_7] : memref<512x256xf32, #tpu.memory_space<vmem>>, vector<512x256xf32>
    %cst_8 = arith.constant dense<0.000000e+00> : vector<8x256xf32>
    %9 = tpu.matmul %7, %8, %cst_8 {dimension_numbers = #tpu.dot_dimension_numbers<[1], [0], [0], [1], [0, 0, 1, 1], [], []>} : vector<8x512xf32>, vector<512x256xf32>, vector<8x256xf32> -> vector<8x256xf32>
    %c0_9 = arith.constant 0 : index
    %c0_10 = arith.constant 0 : index
    %10 = vector.load %arg5[%c0_9, %c0_10] : memref<1x256xf32, #tpu.memory_space<vmem>>, vector<1x256xf32>
    %11 = vector.broadcast %10 : vector<1x256xf32> to vector<8x256xf32>
    %12 = arith.addf %9, %11 : vector<8x256xf32>
    %cst_11 = arith.constant 0.000000e+00 : f32
    %13 = vector.broadcast %cst_11 : f32 to vector<8x256xf32>
    %14 = arith.maximumf %12, %13 : vector<8x256xf32>
    %c0_12 = arith.constant 0 : index
    %c0_13 = arith.constant 0 : index
    %15 = vector.load %arg6[%c0_12, %c0_13] : memref<256x128xf32, #tpu.memory_space<vmem>>, vector<256x128xf32>
    %cst_14 = arith.constant dense<0.000000e+00> : vector<8x128xf32>
    %16 = tpu.matmul %14, %15, %cst_14 {dimension_numbers = #tpu.dot_dimension_numbers<[1], [0], [0], [1], [0, 0, 1, 1], [], []>} : vector<8x256xf32>, vector<256x128xf32>, vector<8x128xf32> -> vector<8x128xf32>
    %c0_15 = arith.constant 0 : index
    %c0_16 = arith.constant 0 : index
    %17 = vector.load %arg7[%c0_15, %c0_16] : memref<1x128xf32, #tpu.memory_space<vmem>>, vector<1x128xf32>
    %18 = vector.broadcast %17 : vector<1x128xf32> to vector<8x128xf32>
    %19 = arith.addf %16, %18 : vector<8x128xf32>
    %c0_17 = arith.constant 0 : index
    %c0_18 = arith.constant 0 : index
    %20 = vector.load %arg8[%c0_17, %c0_18] : memref<256x128xf32, #tpu.memory_space<vmem>>, vector<256x128xf32>
    %cst_19 = arith.constant dense<0.000000e+00> : vector<8x128xf32>
    %21 = tpu.matmul %14, %20, %cst_19 {dimension_numbers = #tpu.dot_dimension_numbers<[1], [0], [0], [1], [0, 0, 1, 1], [], []>} : vector<8x256xf32>, vector<256x128xf32>, vector<8x128xf32> -> vector<8x128xf32>
    %c0_20 = arith.constant 0 : index
    %c0_21 = arith.constant 0 : index
    %22 = vector.load %arg9[%c0_20, %c0_21] : memref<1x128xf32, #tpu.memory_space<vmem>>, vector<1x128xf32>
    %23 = vector.broadcast %22 : vector<1x128xf32> to vector<8x128xf32>
    %24 = arith.addf %21, %23 : vector<8x128xf32>
    %25 = arith.negf %24 : vector<8x128xf32>
    %26 = math.exp %25 : vector<8x128xf32>
    %cst_22 = arith.constant 1.000000e+00 : f32
    %27 = vector.broadcast %cst_22 : f32 to vector<8x128xf32>
    %28 = arith.addf %27, %26 : vector<8x128xf32>
    %29 = arith.divf %27, %28 : vector<8x128xf32>
    %cst_23 = arith.constant 5.000000e-01 : f32
    %30 = vector.broadcast %cst_23 : f32 to vector<8x128xf32>
    %31 = arith.mulf %30, %29 : vector<8x128xf32>
    %32 = math.exp %31 : vector<8x128xf32>
    %c0_24 = arith.constant 0 : index
    %c0_25 = arith.constant 0 : index
    %33 = vector.load %arg1[%c0_24, %c0_25] : memref<8x128xf32, #tpu.memory_space<vmem>>, vector<8x128xf32>
    %34 = arith.mulf %32, %33 : vector<8x128xf32>
    %35 = arith.addf %19, %34 : vector<8x128xf32>
    %c0_26 = arith.constant 0 : index
    %c0_27 = arith.constant 0 : index
    %36 = vector.load %arg10[%c0_26, %c0_27] : memref<128x256xf32, #tpu.memory_space<vmem>>, vector<128x256xf32>
    %cst_28 = arith.constant dense<0.000000e+00> : vector<8x256xf32>
    %37 = tpu.matmul %35, %36, %cst_28 {dimension_numbers = #tpu.dot_dimension_numbers<[1], [0], [0], [1], [0, 0, 1, 1], [], []>} : vector<8x128xf32>, vector<128x256xf32>, vector<8x256xf32> -> vector<8x256xf32>
    %c0_29 = arith.constant 0 : index
    %c0_30 = arith.constant 0 : index
    %38 = vector.load %arg11[%c0_29, %c0_30] : memref<1x256xf32, #tpu.memory_space<vmem>>, vector<1x256xf32>
    %39 = vector.broadcast %38 : vector<1x256xf32> to vector<8x256xf32>
    %40 = arith.addf %37, %39 : vector<8x256xf32>
    %cst_31 = arith.constant 0.000000e+00 : f32
    %41 = vector.broadcast %cst_31 : f32 to vector<8x256xf32>
    %42 = arith.maximumf %40, %41 : vector<8x256xf32>
    %c0_32 = arith.constant 0 : index
    %c0_33 = arith.constant 0 : index
    %43 = vector.load %arg12[%c0_32, %c0_33] : memref<256x512xf32, #tpu.memory_space<vmem>>, vector<256x512xf32>
    %cst_34 = arith.constant dense<0.000000e+00> : vector<8x512xf32>
    %44 = tpu.matmul %42, %43, %cst_34 {dimension_numbers = #tpu.dot_dimension_numbers<[1], [0], [0], [1], [0, 0, 1, 1], [], []>} : vector<8x256xf32>, vector<256x512xf32>, vector<8x512xf32> -> vector<8x512xf32>
    %c0_35 = arith.constant 0 : index
    %c0_36 = arith.constant 0 : index
    %45 = vector.load %arg13[%c0_35, %c0_36] : memref<1x512xf32, #tpu.memory_space<vmem>>, vector<1x512xf32>
    %46 = vector.broadcast %45 : vector<1x512xf32> to vector<8x512xf32>
    %47 = arith.addf %44, %46 : vector<8x512xf32>
    %cst_37 = arith.constant 0.000000e+00 : f32
    %48 = vector.broadcast %cst_37 : f32 to vector<8x512xf32>
    %49 = arith.maximumf %47, %48 : vector<8x512xf32>
    %c0_38 = arith.constant 0 : index
    %c0_39 = arith.constant 0 : index
    %50 = vector.load %arg14[%c0_38, %c0_39] : memref<512x256xf32, #tpu.memory_space<vmem>>, vector<512x256xf32>
    %cst_40 = arith.constant dense<0.000000e+00> : vector<8x256xf32>
    %51 = tpu.matmul %49, %50, %cst_40 {dimension_numbers = #tpu.dot_dimension_numbers<[1], [0], [0], [1], [0, 0, 1, 1], [], []>} : vector<8x512xf32>, vector<512x256xf32>, vector<8x256xf32> -> vector<8x256xf32>
    %c0_41 = arith.constant 0 : index
    %c0_42 = arith.constant 0 : index
    %52 = vector.load %arg15[%c0_41, %c0_42] : memref<1x256xf32, #tpu.memory_space<vmem>>, vector<1x256xf32>
    %53 = vector.broadcast %52 : vector<1x256xf32> to vector<8x256xf32>
    %54 = arith.addf %51, %53 : vector<8x256xf32>
    %cst_43 = arith.constant 0.000000e+00 : f32
    %55 = vector.broadcast %cst_43 : f32 to vector<8x256xf32>
    %56 = arith.maximumf %54, %55 : vector<8x256xf32>
    %c0_44 = arith.constant 0 : index
    %c0_45 = arith.constant 0 : index
    %57 = vector.load %arg16[%c0_44, %c0_45] : memref<8x256xf32, #tpu.memory_space<vmem>>, vector<8x256xf32>
    tpu.vector_store %arg16[%c0_44, %c0_45], %56 {strides = array<i32>} : memref<8x256xf32, #tpu.memory_space<vmem>>, vector<8x256xf32>,
    %c0_46 = arith.constant 0 : index
    %c0_47 = arith.constant 0 : index
    %58 = vector.load %arg17[%c0_46, %c0_47] : memref<8x128xf32, #tpu.memory_space<vmem>>, vector<8x128xf32>
    tpu.vector_store %arg17[%c0_46, %c0_47], %19 {strides = array<i32>} : memref<8x128xf32, #tpu.memory_space<vmem>>, vector<8x128xf32>,
    %c0_48 = arith.constant 0 : index
    %c0_49 = arith.constant 0 : index
    %59 = vector.load %arg18[%c0_48, %c0_49] : memref<8x128xf32, #tpu.memory_space<vmem>>, vector<8x128xf32>
    tpu.vector_store %arg18[%c0_48, %c0_49], %29 {strides = array<i32>} : memref<8x128xf32, #tpu.memory_space<vmem>>, vector<8x128xf32>,
    return
  }
}

</mosaic_0001>

<bundles_post_ra>
// kernel: vae_forward.1
= control target key start
LH: loop header
LB: loop body
LE: loop exit
PB: predicated region body
PF: predicated region fallthrough
CT: control target
= control target key end

     0   :  { %s2374_s0 = inlined_call_operand.vmem [shape: f32[8,256], index: 0, kind: input, shape index: {}]   ;;  %s2375_s1 = inlined_call_operand.vmem [shape: f32[8,128], index: 1, kind: input, shape index: {}]   ;;  %s2376_s2 = inlined_call_operand.hbm [shape: f32[256,512], index: 2, kind: input, shape index: {}]   ;;  %s2377_s3 = inlined_call_operand.vmem [shape: f32[1,512], index: 3, kind: input, shape index: {}]   ;;  %s2378_s4 = inlined_call_operand.hbm [shape: f32[512,256], index: 4, kind: input, shape index: {}]   ;;  %s2379_s5 = inlined_call_operand.hbm [shape: f32[1,256], index: 5, kind: input, shape index: {}]   ;;  %s2380_s6 = inlined_call_operand.hbm [shape: f32[256,128], index: 6, kind: input, shape index: {}]   ;;  %s2381_s7 = inlined_call_operand.hbm [shape: f32[1,128], index: 7, kind: input, shape index: {}]   ;;  %s2382_s8 = inlined_call_operand.hbm [shape: f32[256,128], index: 8, kind: input, shape index: {}]   ;;  %s2383_s9 = inlined_call_operand.vmem [shape: f32[1,128], index: 9, kind: input, shape index: {}]   ;;  %s2384_s10 = inlined_call_operand.hbm [shape: f32[128,256], index: 10, kind: input, shape index: {}]   ;;  %s2385_s11 = inlined_call_operand.hbm [shape: f32[1,256], index: 11, kind: input, shape index: {}]   ;;  %s2386_s12 = inlined_call_operand.hbm [shape: f32[256,512], index: 12, kind: input, shape index: {}]   ;;  %s2387_s13 = inlined_call_operand.vmem [shape: f32[1,512], index: 13, kind: input, shape index: {}]   ;;  %s2388_s14 = inlined_call_operand.hbm [shape: f32[512,256], index: 14, kind: input, shape index: {}]   ;;  %s2389_s15 = inlined_call_operand.hbm [shape: f32[1,256], index: 15, kind: input, shape index: {}]   ;;  %s2390_s16 = inlined_call_operand.hbm [shape: f32[8,256], index: 16, kind: output, shape index: {0}]   ;;  %s2391_s17 = inlined_call_operand.hbm [shape: f32[8,128], index: 17, kind: output, shape index: {1}]   ;;  %s2392_s18 = inlined_call_operand.hbm [shape: f32[8,128], index: 18, kind: output, shape index: {2}]  }
   0x1   :  { %2394 = sst [smem:[#allocation32_spill]] %s2374_s0 }
   0x2   :  { %2395 = sst [smem:[#allocation33_spill]] %s2375_s1 }
   0x3   :  { %2396 = sst [smem:[#allocation34_spill]] %s2376_s2 }
   0x4   :  { %24 = vsyncpa [#allocation3], 0 }
   0x5   :  { %25 = vsyncpa [#allocation6], 0 }
   0x6   :  { %26 = vsyncpa [#allocation9], 0 }
   0x7   :  { %27 = vsyncpa [#allocation12], 0 }
   0x8   :  { %28 = vsyncpa [#allocation15], 0 }
   0x9   :  { %29 = vsyncpa [#allocation18], 0 }
   0xa   :  { %30 = vsyncpa [#allocation4], 0 }
   0xb   :  { %31 = vsyncpa [#allocation22], 0  ;;  %s2155_s27 = smov [#allocation5]  }
   0xc   :  { %s55_s28 = sshll.u32 %s2155_s27, 4  ;;  %s56_s28 = int_to_ptr.vmem [resolvable:$true] %s55_s28 }
   0xd   :  { %s1867_s29 = scalar_lea.vmem %s56_s28, 16384  ;;  %p1872_p1 = scmp.lt.s32.totalorder %s56_s28, %s56_s28 }
   0xe   :  { %p1868_p0 = scmp.ne.s32.totalorder %s56_s28, %s1867_s29  ;;  %p1873_p2 = scmp.lt.s32.totalorder %s1867_s29, %s1867_s29 }
  0x10   :  { %p1874_p3 = por %p1873_p2, %p1872_p1 }
  0x12   :  { %p1875_p4 = pnand %p1874_p3, %p1868_p0 }
  0x14   :  { %1878 = shalt.err (!%p1875_p4)
}
  0x15   :  { %s2156_s30 = smov 256   ;;  %s2157_s0 = smov 16  }
  0x16   :  { %61 = dma.hbm_to_vmem [thread:$0]  %s2378_s4, 16384, %s56_s28, [#allocation6], %s2156_s30, %s2156_s30, %s2157_s0  }
  0x17   :  { %s2158_s20 = smov [#allocation8]  }
  0x18   :  { %s77_s21 = sshll.u32 %s2158_s20, 4  ;;  %s78_s21 = int_to_ptr.vmem [resolvable:$true] %s77_s21 }
  0x19   :  { %s1887_s22 = scalar_lea.vmem %s78_s21, 4096  ;;  %p1892_p6 = scmp.lt.s32.totalorder %s78_s21, %s78_s21 }
  0x1a   :  { %p1888_p5 = scmp.ne.s32.totalorder %s78_s21, %s1887_s22  ;;  %p1893_p7 = scmp.lt.s32.totalorder %s1887_s22, %s1887_s22 }
  0x1c   :  { %p1894_p8 = por %p1893_p7, %p1892_p6 }
  0x1e   :  { %p1895_p9 = pnand %p1894_p8, %p1888_p5 }
  0x20   :  { %1898 = shalt.err (!%p1895_p9)
}
  0x21   :  { %s2159_s2 = smov 128   ;;  %s2160_s23 = smov 8  }
  0x22   :  { %83 = dma.hbm_to_vmem [thread:$0]  %s2380_s6, 4096, %s78_s21, [#allocation9], %s2159_s2, %s2159_s2, %s2160_s23  }
  0x23   :  { %s2161_s26 = smov [#allocation11]   ;;  %s2162_s29 = smov [#allocation14]  }
  0x24   :  { %s99_s27 = sshll.u32 %s2161_s26, 4  ;;  %s126_s4 = sshll.u32 %s2162_s29, 4  ;;  %s100_s27 = int_to_ptr.vmem [resolvable:$true] %s99_s27  ;;  %s127_s4 = int_to_ptr.vmem [resolvable:$true] %s126_s4 }
  0x25   :  { %s1907_s28 = scalar_lea.vmem %s100_s27, 4096  ;;  %p1912_p11 = scmp.lt.s32.totalorder %s100_s27, %s100_s27 }
  0x26   :  { %p1908_p10 = scmp.ne.s32.totalorder %s100_s27, %s1907_s28  ;;  %p1913_p12 = scmp.lt.s32.totalorder %s1907_s28, %s1907_s28 }
  0x28   :  { %p1914_p13 = por %p1913_p12, %p1912_p11 }
  0x2a   :  { %p1915_p0 = pnand %p1914_p13, %p1908_p10 }
  0x2c   :  { %1918 = shalt.err (!%p1915_p0)
}
  0x2d   :  { %105 = dma.hbm_to_vmem [thread:$0]  %s2382_s8, 4096, %s100_s27, [#allocation12], %s2159_s2, %s2159_s2, %s2160_s23  }
  0x2e   :  { %s1927_s20 = scalar_lea.vmem %s127_s4, 32  ;;  %p1932_p2 = scmp.lt.s32.totalorder %s127_s4, %s127_s4 }
  0x2f   :  { %p1928_p1 = scmp.ne.s32.totalorder %s127_s4, %s1927_s20  ;;  %p1933_p3 = scmp.lt.s32.totalorder %s1927_s20, %s1927_s20 }
  0x31   :  { %p1934_p4 = por %p1933_p3, %p1932_p2 }
  0x33   :  { %p1935_p5 = pnand %p1934_p4, %p1928_p1 }
  0x35   :  { %1938 = shalt.err (!%p1935_p5)
}
  0x36   :  { %129 = dma.hbm_to_vmem [thread:$0]  %s2385_s11, 32, %s127_s4, [#allocation15]  }
  0x37   :  { %s2163_s22 = smov [#allocation17]   ;;  %s2164_s25 = smov [#allocation2]  }
  0x38   :  { %s149_s24 = sshll.u32 %s2163_s22, 4  ;;  %s41_s26 = sshll.u32 %s2164_s25, 4  ;;  %s150_s24 = int_to_ptr.vmem [resolvable:$true] %s149_s24  ;;  %s42_s26 = int_to_ptr.vmem [resolvable:$true] %s41_s26 }
  0x39   :  { %s1947_s29 = scalar_lea.vmem %s150_s24, 16384  ;;  %p1952_p7 = scmp.lt.s32.totalorder %s150_s24, %s150_s24 }
  0x3a   :  { %p1948_p6 = scmp.ne.s32.totalorder %s150_s24, %s1947_s29  ;;  %p1953_p8 = scmp.lt.s32.totalorder %s1947_s29, %s1947_s29 }
  0x3c   :  { %p1954_p9 = por %p1953_p8, %p1952_p7 }
  0x3e   :  { %p1955_p10 = pnand %p1954_p9, %p1948_p6 }
  0x40   :  { %1958 = shalt.err (!%p1955_p10)
}
  0x41   :  { %155 = dma.hbm_to_vmem [thread:$0]  %s2388_s14, 16384, %s150_s24, [#allocation18], %s2156_s30, %s2156_s30, %s2157_s0  }
  0x42   :  { %s1967_s11 = scalar_lea.vmem %s42_s26, 16384  ;;  %p1972_p12 = scmp.lt.s32.totalorder %s42_s26, %s42_s26 }
  0x43   :  { %p1968_p11 = scmp.ne.s32.totalorder %s42_s26, %s1967_s11  ;;  %p1973_p13 = scmp.lt.s32.totalorder %s1967_s11, %s1967_s11 }
  0x45   :  { %p1974_p0 = por %p1973_p13, %p1972_p12 }
  0x47   :  { %p1975_p1 = pnand %p1974_p0, %p1968_p11 }
  0x49   :  { %1978 = shalt.err (!%p1975_p1)
}
  0x4a   :  { %s2165_s23 = smov 512   ;;  %s2166_s27 = smov 32  }
  0x4b   :  { %s2397_s19 = sld [smem:[#allocation34_spill]]  ;;  %s2167_s1 = smov [#allocation7]  }
  0x4c   :  { %s68_s20 = sshll.u32 %s2167_s1, 4  ;;  %s2168_s6 = smov [#allocation10]   ;;  %s69_s20 = int_to_ptr.vmem [resolvable:$true] %s68_s20 }
  0x4d   :  { %s90_s14 = sshll.u32 %s2168_s6, 4  ;;  %s1987_s21 = scalar_lea.vmem %s69_s20, 32  ;;  %s91_s14 = int_to_ptr.vmem [resolvable:$true] %s90_s14 }
  0x4e   :  { %p1988_p2 = scmp.ne.s32.totalorder %s69_s20, %s1987_s21  ;;  %p1992_p3 = scmp.lt.s32.totalorder %s69_s20, %s69_s20 }
  0x4f   :  { %p1993_p4 = scmp.lt.s32.totalorder %s1987_s21, %s1987_s21 }
  0x51   :  { %47 = dma.hbm_to_vmem [thread:$0]  %s2397_s19, 16384, %s42_s26, [#allocation3], %s2165_s23, %s2165_s23, %s2166_s27  }
  0x52   :  { %p1994_p5 = por %p1993_p4, %p1992_p3 }
  0x54   :  { %p1995_p6 = pnand %p1994_p5, %p1988_p2 }
  0x56   :  { %1998 = shalt.err (!%p1995_p6)
}
  0x57   :  { %71 = dma.hbm_to_vmem [thread:$0]  %s2379_s5, 32, %s69_s20, [#allocation6]  }
  0x58   :  { %s2007_s25 = scalar_lea.vmem %s91_s14, 16  ;;  %s2011_s26 = scalar_lea.vmem %s91_s14, 32 }
  0x59   :  { %p2008_p7 = scmp.ne.s32.totalorder %s91_s14, %s2007_s25  ;;  %p2012_p8 = scmp.lt.s32.totalorder %s91_s14, %s91_s14 }
  0x5a   :  { %p2013_p9 = scmp.lt.s32.totalorder %s2011_s26, %s2007_s25 }
  0x5c   :  { %p2014_p10 = por %p2013_p9, %p2012_p8 }
  0x5e   :  { %p2015_p11 = pnand %p2014_p10, %p2008_p7 }
  0x60   :  { %2018 = shalt.err (!%p2015_p11)
}
  0x61   :  { %93 = dma.hbm_to_vmem [thread:$0]  %s2381_s7, 16, %s91_s14, [#allocation9]  }
  0x62   :  { %s2169_s2 = smov [#allocation13]   ;;  %s2170_s4 = smov [#allocation16]  }
  0x63   :  { %s113_s11 = sshll.u32 %s2169_s2, 4  ;;  %s135_s28 = sshll.u32 %s2170_s4, 4  ;;  %s114_s11 = int_to_ptr.vmem [resolvable:$true] %s113_s11  ;;  %s136_s28 = int_to_ptr.vmem [resolvable:$true] %s135_s28 }
  0x64   :  { %s2027_s19 = scalar_lea.vmem %s114_s11, 4096  ;;  %p2032_p13 = scmp.lt.s32.totalorder %s114_s11, %s114_s11 }
  0x65   :  { %p2028_p12 = scmp.ne.s32.totalorder %s114_s11, %s2027_s19  ;;  %p2033_p0 = scmp.lt.s32.totalorder %s2027_s19, %s2027_s19 }
  0x67   :  { %p2034_p1 = por %p2033_p0, %p2032_p13 }
  0x69   :  { %p2035_p2 = pnand %p2034_p1, %p2028_p12 }
  0x6b   :  { %2038 = shalt.err (!%p2035_p2)
}
  0x6c   :  { %119 = dma.hbm_to_vmem [thread:$0]  %s2384_s10, 4096, %s114_s11, [#allocation12], %s2156_s30, %s2156_s30, %s2157_s0  }
  0x6d   :  { %s2047_s7 = scalar_lea.vmem %s136_s28, 16384  ;;  %p2052_p4 = scmp.lt.s32.totalorder %s136_s28, %s136_s28 }
  0x6e   :  { %p2048_p3 = scmp.ne.s32.totalorder %s136_s28, %s2047_s7  ;;  %p2053_p5 = scmp.lt.s32.totalorder %s2047_s7, %s2047_s7 }
  0x70   :  { %p2054_p6 = por %p2053_p5, %p2052_p4 }
  0x72   :  { %p2055_p7 = pnand %p2054_p6, %p2048_p3 }
  0x74   :  { %2058 = shalt.err (!%p2055_p7)
}
  0x75   :  { %141 = dma.hbm_to_vmem [thread:$0]  %s2386_s12, 16384, %s136_s28, [#allocation15], %s2165_s23, %s2165_s23, %s2166_s27  }
  0x76   :  { %s2171_s14 = smov [#allocation19]  }
  0x77   :  { %s162_s21 = sshll.u32 %s2171_s14, 4  ;;  %s163_s21 = int_to_ptr.vmem [resolvable:$true] %s162_s21 }
  0x78   :  { %s2067_s22 = scalar_lea.vmem %s163_s21, 32  ;;  %p2072_p9 = scmp.lt.s32.totalorder %s163_s21, %s163_s21 }
  0x79   :  { %p2068_p8 = scmp.ne.s32.totalorder %s163_s21, %s2067_s22  ;;  %p2073_p10 = scmp.lt.s32.totalorder %s2067_s22, %s2067_s22 }
  0x7b   :  { %p2074_p11 = por %p2073_p10, %p2072_p9 }
  0x7d   :  { %p2075_p12 = pnand %p2074_p11, %p2068_p8 }
  0x7f   :  { %2078 = shalt.err (!%p2075_p12)
}
  0x80   :  { %165 = dma.hbm_to_vmem [thread:$0]  %s2389_s15, 32, %s163_s21, [#allocation18]  }
  0x81   :  { %2139 = dma.done.wait [#allocation3], 16384  }
  0x82   :  { %2140 = vsyncadd [#allocation3], 4294950912 }
  0x83   :  { %2141 = dma.done.wait [#allocation6], 16416  }
  0x84   :  { %2142 = vsyncadd [#allocation6], 4294950880 }
  0x85   :  { %2143 = dma.done.wait [#allocation9], 4112  }
  0x86   :  { %2144 = vsyncadd [#allocation9], 4294963184 }
  0x87   :  { %2145 = dma.done.wait [#allocation12], 8192  }
  0x88   :  { %2146 = vsyncadd [#allocation12], 4294959104 }
  0x89   :  { %2147 = dma.done.wait [#allocation15], 16416  }
  0x8a   :  { %2148 = vsyncadd [#allocation15], 4294950880 }
  0x8b   :  { %2149 = dma.done.wait [#allocation18], 16416  }
  0x8c   :  { %2150 = vsyncadd [#allocation18], 4294950880  ;;  %v262_v0 = vld [vmem:[#allocation2 + $0x1e8] sm:$0xff]  ;;  %v264_v1 = vld [vmem:[#allocation2 + $0x1f8] sm:$0xff]  ;;  %s2398_s0 = sld [smem:[#allocation32_spill]] }
  0x8d   :  { %v261_v2 = vld [vmem:[#allocation2 + $0x1e0] sm:$0xff]  ;;  %351 = vmatprep.subr.mxu0 %v262_v0  ;;  %422 = vmatprep.subr.mxu1 %v264_v1  ;;  %v263_v3 = vld [vmem:[#allocation2 + $0x1f0] sm:$0xff]  ;;  %v258_v4 = vld [vmem:[#allocation2 + $0x1c8] sm:$0xff]  ;;  %s2399_s2 = sld [smem:[#allocation33_spill]] }
  0x8e   :  { %v260_v5 = vld [vmem:[#allocation2 + $0x1d8] sm:$0xff]  ;;  %352 = vmatpush1.msra.mxu0 %v261_v2  ;;  %423 = vmatpush1.msra.mxu1 %v263_v3  ;;  %v257_v6 = vld [vmem:[#allocation2 + $0x1c0] sm:$0xff]  ;;  %v259_v7 = vld [vmem:[#allocation2 + $0x1d0] sm:$0xff] }
  0x8f   :  { %v254_v8 = vld [vmem:[#allocation2 + $0x1a8] sm:$0xff]  ;;  %353 = vmatprep.subr.mxu0 %v258_v4  ;;  %424 = vmatprep.subr.mxu1 %v260_v5  ;;  %v256_v9 = vld [vmem:[#allocation2 + $0x1b8] sm:$0xff]  ;;  %v253_v10 = vld [vmem:[#allocation2 + $0x1a0] sm:$0xff] }
  0x90   :  { %v255_v11 = vld [vmem:[#allocation2 + $0x1b0] sm:$0xff]  ;;  %354 = vmatpush1.msra.mxu0 %v257_v6  ;;  %425 = vmatpush1.msra.mxu1 %v259_v7  ;;  %v250_v12 = vld [vmem:[#allocation2 + $0x188] sm:$0xff]  ;;  %v252_v13 = vld [vmem:[#allocation2 + $0x198] sm:$0xff] }
  0x91   :  { %355 = vmatprep.subr.mxu0 %v254_v8  ;;  %426 = vmatprep.subr.mxu1 %v256_v9  ;;  %v249_v14 = vld [vmem:[#allocation2 + $0x180] sm:$0xff]  ;;  %v251_v15 = vld [vmem:[#allocation2 + $0x190] sm:$0xff]  ;;  %v246_v16 = vld [vmem:[#allocation2 + $0x168] sm:$0xff] }
  0x92   :  { %356 = vmatpush1.msra.mxu0 %v253_v10  ;;  %427 = vmatpush1.msra.mxu1 %v255_v11  ;;  %v248_v17 = vld [vmem:[#allocation2 + $0x178] sm:$0xff]  ;;  %v245_v18 = vld [vmem:[#allocation2 + $0x160] sm:$0xff]  ;;  %v247_v19 = vld [vmem:[#allocation2 + $0x170] sm:$0xff] }
  0x93   :  { %357 = vmatprep.subr.mxu0 %v250_v12  ;;  %428 = vmatprep.subr.mxu1 %v252_v13  ;;  %v242_v20 = vld [vmem:[#allocation2 + $0x148] sm:$0xff]  ;;  %v244_v21 = vld [vmem:[#allocation2 + $0x158] sm:$0xff]  ;;  %v241_v22 = vld [vmem:[#allocation2 + $0x140] sm:$0xff] }
  0x94   :  { %358 = vmatpush1.msra.mxu0 %v249_v14  ;;  %429 = vmatpush1.msra.mxu1 %v251_v15  ;;  %v243_v23 = vld [vmem:[#allocation2 + $0x150] sm:$0xff]  ;;  %v238_v24 = vld [vmem:[#allocation2 + $0x128] sm:$0xff]  ;;  %v240_v25 = vld [vmem:[#allocation2 + $0x138] sm:$0xff] }
  0x95   :  { %359 = vmatprep.subr.mxu0 %v246_v16  ;;  %430 = vmatprep.subr.mxu1 %v248_v17  ;;  %v237_v26 = vld [vmem:[#allocation2 + $0x120] sm:$0xff]  ;;  %v239_v27 = vld [vmem:[#allocation2 + $0x130] sm:$0xff]  ;;  %v234_v28 = vld [vmem:[#allocation2 + $0x108] sm:$0xff] }
  0x96   :  { %360 = vmatpush1.msra.mxu0 %v245_v18  ;;  %431 = vmatpush1.msra.mxu1 %v247_v19  ;;  %v236_v29 = vld [vmem:[#allocation2 + $0x118] sm:$0xff]  ;;  %v233_v30 = vld [vmem:[#allocation2 + $0x100] sm:$0xff]  ;;  %v235_v31 = vld [vmem:[#allocation2 + $0x110] sm:$0xff] }
  0x97   :  { %361 = vmatprep.subr.mxu0 %v242_v20  ;;  %432 = vmatprep.subr.mxu1 %v244_v21  ;;  %v230_v32 = vld [vmem:[#allocation2 + $0xe8] sm:$0xff]  ;;  %v232_v33 = vld [vmem:[#allocation2 + $0xf8] sm:$0xff]  ;;  %v229_v34 = vld [vmem:[#allocation2 + $0xe0] sm:$0xff] }
  0x98   :  { %362 = vmatpush1.msra.mxu0 %v241_v22  ;;  %433 = vmatpush1.msra.mxu1 %v243_v23  ;;  %v231_v35 = vld [vmem:[#allocation2 + $0xf0] sm:$0xff]  ;;  %v226_v36 = vld [vmem:[#allocation2 + $0xc8] sm:$0xff]  ;;  %v228_v37 = vld [vmem:[#allocation2 + $0xd8] sm:$0xff] }
  0x99   :  { %363 = vmatprep.subr.mxu0 %v238_v24  ;;  %434 = vmatprep.subr.mxu1 %v240_v25  ;;  %v225_v38 = vld [vmem:[#allocation2 + $0xc0] sm:$0xff]  ;;  %v227_v39 = vld [vmem:[#allocation2 + $0xd0] sm:$0xff]  ;;  %v222_v40 = vld [vmem:[#allocation2 + $0xa8] sm:$0xff] }
  0x9a   :  { %364 = vmatpush1.msra.mxu0 %v237_v26  ;;  %435 = vmatpush1.msra.mxu1 %v239_v27  ;;  %v224_v41 = vld [vmem:[#allocation2 + $0xb8] sm:$0xff]  ;;  %v221_v42 = vld [vmem:[#allocation2 + $0xa0] sm:$0xff]  ;;  %v223_v43 = vld [vmem:[#allocation2 + $0xb0] sm:$0xff] }
  0x9b   :  { %365 = vmatprep.subr.mxu0 %v234_v28  ;;  %436 = vmatprep.subr.mxu1 %v236_v29  ;;  %v218_v44 = vld [vmem:[#allocation2 + $0x88] sm:$0xff]  ;;  %v220_v45 = vld [vmem:[#allocation2 + $0x98] sm:$0xff]  ;;  %v217_v46 = vld [vmem:[#allocation2 + $0x80] sm:$0xff] }
  0x9c   :  { %366 = vmatpush1.msra.mxu0 %v233_v30  ;;  %437 = vmatpush1.msra.mxu1 %v235_v31  ;;  %v219_v47 = vld [vmem:[#allocation2 + $0x90] sm:$0xff]  ;;  %v214_v48 = vld [vmem:[#allocation2 + $0x68] sm:$0xff]  ;;  %v216_v49 = vld [vmem:[#allocation2 + $0x78] sm:$0xff] }
  0x9d   :  { %367 = vmatprep.subr.mxu0 %v230_v32  ;;  %438 = vmatprep.subr.mxu1 %v232_v33  ;;  %v213_v50 = vld [vmem:[#allocation2 + $0x60] sm:$0xff]  ;;  %v215_v51 = vld [vmem:[#allocation2 + $0x70] sm:$0xff]  ;;  %v210_v52 = vld [vmem:[#allocation2 + $0x48] sm:$0xff] }
  0x9e   :  { %368 = vmatpush1.msra.mxu0 %v229_v34  ;;  %439 = vmatpush1.msra.mxu1 %v231_v35  ;;  %v212_v53 = vld [vmem:[#allocation2 + $0x58] sm:$0xff]  ;;  %v209_v54 = vld [vmem:[#allocation2 + $0x40] sm:$0xff]  ;;  %v211_v55 = vld [vmem:[#allocation2 + $0x50] sm:$0xff] }
  0x9f   :  { %369 = vmatprep.subr.mxu0 %v226_v36  ;;  %440 = vmatprep.subr.mxu1 %v228_v37  ;;  %v206_v56 = vld [vmem:[#allocation2 + $0x28] sm:$0xff]  ;;  %v208_v57 = vld [vmem:[#allocation2 + $0x38] sm:$0xff]  ;;  %v205_v58 = vld [vmem:[#allocation2 + $0x20] sm:$0xff] }
  0xa0   :  { %370 = vmatpush1.msra.mxu0 %v225_v38  ;;  %441 = vmatpush1.msra.mxu1 %v227_v39  ;;  %v207_v59 = vld [vmem:[#allocation2 + $0x30] sm:$0xff]  ;;  %v202_v60 = vld [vmem:[#allocation2 + $0x8] sm:$0xff]  ;;  %v204_v61 = vld [vmem:[#allocation2 + $0x18] sm:$0xff] }
  0xa1   :  { %371 = vmatprep.subr.mxu0 %v222_v40  ;;  %442 = vmatprep.subr.mxu1 %v224_v41  ;;  %v201_v62 = vld [vmem:[#allocation2] sm:$0xff]  ;;  %v203_v63 = vld [vmem:[#allocation2 + $0x10] sm:$0xff]  ;;  %v326_v0 = vld [vmem:[#allocation2 + $0x3e8] sm:$0xff] }
  0xa2   :  { %372 = vmatpush1.msra.mxu0 %v221_v42  ;;  %443 = vmatpush1.msra.mxu1 %v223_v43  ;;  %v328_v1 = vld [vmem:[#allocation2 + $0x3f8] sm:$0xff]  ;;  %v325_v2 = vld [vmem:[#allocation2 + $0x3e0] sm:$0xff]  ;;  %v327_v3 = vld [vmem:[#allocation2 + $0x3f0] sm:$0xff] }
  0xa3   :  { %373 = vmatprep.subr.mxu0 %v218_v44  ;;  %444 = vmatprep.subr.mxu1 %v220_v45  ;;  %v322_v4 = vld [vmem:[#allocation2 + $0x3c8] sm:$0xff]  ;;  %v324_v5 = vld [vmem:[#allocation2 + $0x3d8] sm:$0xff]  ;;  %v321_v6 = vld [vmem:[#allocation2 + $0x3c0] sm:$0xff] }
  0xa4   :  { %374 = vmatpush1.msra.mxu0 %v217_v46  ;;  %445 = vmatpush1.msra.mxu1 %v219_v47  ;;  %v323_v7 = vld [vmem:[#allocation2 + $0x3d0] sm:$0xff]  ;;  %v318_v8 = vld [vmem:[#allocation2 + $0x3a8] sm:$0xff]  ;;  %v320_v9 = vld [vmem:[#allocation2 + $0x3b8] sm:$0xff] }
  0xa5   :  { %375 = vmatprep.subr.mxu0 %v214_v48  ;;  %446 = vmatprep.subr.mxu1 %v216_v49  ;;  %v317_v10 = vld [vmem:[#allocation2 + $0x3a0] sm:$0xff]  ;;  %v319_v11 = vld [vmem:[#allocation2 + $0x3b0] sm:$0xff]  ;;  %v314_v12 = vld [vmem:[#allocation2 + $0x388] sm:$0xff] }
  0xa6   :  { %376 = vmatpush1.msra.mxu0 %v213_v50  ;;  %447 = vmatpush1.msra.mxu1 %v215_v51  ;;  %v316_v13 = vld [vmem:[#allocation2 + $0x398] sm:$0xff]  ;;  %v313_v14 = vld [vmem:[#allocation2 + $0x380] sm:$0xff]  ;;  %v315_v15 = vld [vmem:[#allocation2 + $0x390] sm:$0xff] }
  0xa7   :  { %377 = vmatprep.subr.mxu0 %v210_v52  ;;  %448 = vmatprep.subr.mxu1 %v212_v53  ;;  %v310_v16 = vld [vmem:[#allocation2 + $0x368] sm:$0xff]  ;;  %v312_v17 = vld [vmem:[#allocation2 + $0x378] sm:$0xff]  ;;  %v309_v18 = vld [vmem:[#allocation2 + $0x360] sm:$0xff] }
  0xa8   :  { %378 = vmatpush1.msra.mxu0 %v209_v54  ;;  %449 = vmatpush1.msra.mxu1 %v211_v55  ;;  %v311_v19 = vld [vmem:[#allocation2 + $0x370] sm:$0xff]  ;;  %v306_v20 = vld [vmem:[#allocation2 + $0x348] sm:$0xff]  ;;  %v308_v21 = vld [vmem:[#allocation2 + $0x358] sm:$0xff] }
  0xa9   :  { %379 = vmatprep.subr.mxu0 %v206_v56  ;;  %450 = vmatprep.subr.mxu1 %v208_v57  ;;  %v305_v22 = vld [vmem:[#allocation2 + $0x340] sm:$0xff]  ;;  %v307_v23 = vld [vmem:[#allocation2 + $0x350] sm:$0xff]  ;;  %v302_v24 = vld [vmem:[#allocation2 + $0x328] sm:$0xff] }
  0xaa   :  { %380 = vmatpush1.msra.mxu0 %v205_v58  ;;  %451 = vmatpush1.msra.mxu1 %v207_v59  ;;  %v304_v25 = vld [vmem:[#allocation2 + $0x338] sm:$0xff]  ;;  %v301_v26 = vld [vmem:[#allocation2 + $0x320] sm:$0xff]  ;;  %v303_v27 = vld [vmem:[#allocation2 + $0x330] sm:$0xff] }
  0xab   :  { %381 = vmatprep.subr.mxu0 %v202_v60  ;;  %452 = vmatprep.subr.mxu1 %v204_v61  ;;  %v298_v28 = vld [vmem:[#allocation2 + $0x308] sm:$0xff]  ;;  %v300_v29 = vld [vmem:[#allocation2 + $0x318] sm:$0xff]  ;;  %v297_v30 = vld [vmem:[#allocation2 + $0x300] sm:$0xff] }
  0xac   :  { %382 = vmatpush1.msra.mxu0 %v201_v62  ;;  %453 = vmatpush1.msra.mxu1 %v203_v63  ;;  %v299_v31 = vld [vmem:[#allocation2 + $0x310] sm:$0xff]  ;;  %v294_v32 = vld [vmem:[#allocation2 + $0x2e8] sm:$0xff]  ;;  %v296_v33 = vld [vmem:[#allocation2 + $0x2f8] sm:$0xff] }
  0xad   :  { %383 = vmatprep.subr.mxu0 %v326_v0  ;;  %454 = vmatprep.subr.mxu1 %v328_v1  ;;  %v293_v34 = vld [vmem:[#allocation2 + $0x2e0] sm:$0xff]  ;;  %v295_v35 = vld [vmem:[#allocation2 + $0x2f0] sm:$0xff]  ;;  %v290_v36 = vld [vmem:[#allocation2 + $0x2c8] sm:$0xff] }
  0xae   :  { %384 = vmatpush2.msra.mxu0 %v325_v2  ;;  %455 = vmatpush2.msra.mxu1 %v327_v3  ;;  %v292_v37 = vld [vmem:[#allocation2 + $0x2d8] sm:$0xff]  ;;  %v289_v38 = vld [vmem:[#allocation2 + $0x2c0] sm:$0xff]  ;;  %v291_v39 = vld [vmem:[#allocation2 + $0x2d0] sm:$0xff] }
  0xaf   :  { %385 = vmatprep.subr.mxu0 %v322_v4  ;;  %456 = vmatprep.subr.mxu1 %v324_v5  ;;  %v286_v40 = vld [vmem:[#allocation2 + $0x2a8] sm:$0xff]  ;;  %v288_v41 = vld [vmem:[#allocation2 + $0x2b8] sm:$0xff]  ;;  %v285_v42 = vld [vmem:[#allocation2 + $0x2a0] sm:$0xff] }
  0xb0   :  { %386 = vmatpush2.msra.mxu0 %v321_v6  ;;  %457 = vmatpush2.msra.mxu1 %v323_v7  ;;  %v287_v43 = vld [vmem:[#allocation2 + $0x2b0] sm:$0xff]  ;;  %v282_v44 = vld [vmem:[#allocation2 + $0x288] sm:$0xff]  ;;  %v284_v45 = vld [vmem:[#allocation2 + $0x298] sm:$0xff] }
  0xb1   :  { %387 = vmatprep.subr.mxu0 %v318_v8  ;;  %458 = vmatprep.subr.mxu1 %v320_v9  ;;  %v281_v46 = vld [vmem:[#allocation2 + $0x280] sm:$0xff]  ;;  %v283_v47 = vld [vmem:[#allocation2 + $0x290] sm:$0xff]  ;;  %v278_v48 = vld [vmem:[#allocation2 + $0x268] sm:$0xff] }
  0xb2   :  { %388 = vmatpush2.msra.mxu0 %v317_v10  ;;  %459 = vmatpush2.msra.mxu1 %v319_v11  ;;  %v280_v49 = vld [vmem:[#allocation2 + $0x278] sm:$0xff]  ;;  %v277_v50 = vld [vmem:[#allocation2 + $0x260] sm:$0xff]  ;;  %v279_v51 = vld [vmem:[#allocation2 + $0x270] sm:$0xff] }
  0xb3   :  { %389 = vmatprep.subr.mxu0 %v314_v12  ;;  %460 = vmatprep.subr.mxu1 %v316_v13  ;;  %v274_v52 = vld [vmem:[#allocation2 + $0x248] sm:$0xff]  ;;  %v276_v53 = vld [vmem:[#allocation2 + $0x258] sm:$0xff]  ;;  %v273_v54 = vld [vmem:[#allocation2 + $0x240] sm:$0xff] }
  0xb4   :  { %390 = vmatpush2.msra.mxu0 %v313_v14  ;;  %461 = vmatpush2.msra.mxu1 %v315_v15  ;;  %v275_v55 = vld [vmem:[#allocation2 + $0x250] sm:$0xff]  ;;  %v270_v56 = vld [vmem:[#allocation2 + $0x228] sm:$0xff]  ;;  %v272_v57 = vld [vmem:[#allocation2 + $0x238] sm:$0xff] }
  0xb5   :  { %391 = vmatprep.subr.mxu0 %v310_v16  ;;  %462 = vmatprep.subr.mxu1 %v312_v17  ;;  %v269_v58 = vld [vmem:[#allocation2 + $0x220] sm:$0xff]  ;;  %v271_v59 = vld [vmem:[#allocation2 + $0x230] sm:$0xff]  ;;  %v266_v60 = vld [vmem:[#allocation2 + $0x208] sm:$0xff] }
  0xb6   :  { %392 = vmatpush2.msra.mxu0 %v309_v18  ;;  %463 = vmatpush2.msra.mxu1 %v311_v19  ;;  %v268_v61 = vld [vmem:[#allocation2 + $0x218] sm:$0xff]  ;;  %v265_v62 = vld [vmem:[#allocation2 + $0x200] sm:$0xff]  ;;  %v200_v63 = vld [vmem:[%s2398_s0 + $0x8] sm:$0xff] }
  0xb7   :  { %393 = vmatprep.subr.mxu0 %v306_v20  ;;  %464 = vmatprep.subr.mxu1 %v308_v21  ;;  %v267_v0 = vld [vmem:[#allocation2 + $0x210] sm:$0xff]  ;;  %v199_v1 = vld [vmem:[%s2398_s0] sm:$0xff]  ;;  %v528_v2 = vld [vmem:[#allocation5 + $0xf8] sm:$0xff] }
  0xb8   :  { %394 = vmatpush2.msra.mxu0 %v305_v22  ;;  %465 = vmatpush2.msra.mxu1 %v307_v23  ;;  %v592_v3 = vld [vmem:[#allocation5 + $0x2f8] sm:$0xff]  ;;  %v527_v4 = vld [vmem:[#allocation5 + $0xf0] sm:$0xff]  ;;  %v526_v6 = vld [vmem:[#allocation5 + $0xe8] sm:$0xff] }
  0xb9   :  { %395 = vmatprep.subr.mxu0 %v302_v24  ;;  %466 = vmatprep.subr.mxu1 %v304_v25  ;;  %v591_v5 = vld [vmem:[#allocation5 + $0x2f0] sm:$0xff]  ;;  %v590_v7 = vld [vmem:[#allocation5 + $0x2e8] sm:$0xff]  ;;  %v525_v8 = vld [vmem:[#allocation5 + $0xe0] sm:$0xff] }
  0xba   :  { %396 = vmatpush2.msra.mxu0 %v301_v26  ;;  %467 = vmatpush2.msra.mxu1 %v303_v27  ;;  %v589_v9 = vld [vmem:[#allocation5 + $0x2e0] sm:$0xff]  ;;  %v524_v10 = vld [vmem:[#allocation5 + $0xd8] sm:$0xff]  ;;  %v523_v12 = vld [vmem:[#allocation5 + $0xd0] sm:$0xff] }
  0xbb   :  { %397 = vmatprep.subr.mxu0 %v298_v28  ;;  %468 = vmatprep.subr.mxu1 %v300_v29  ;;  %v588_v11 = vld [vmem:[#allocation5 + $0x2d8] sm:$0xff]  ;;  %v587_v13 = vld [vmem:[#allocation5 + $0x2d0] sm:$0xff]  ;;  %v522_v14 = vld [vmem:[#allocation5 + $0xc8] sm:$0xff] }
  0xbc   :  { %398 = vmatpush2.msra.mxu0 %v297_v30  ;;  %469 = vmatpush2.msra.mxu1 %v299_v31  ;;  %v586_v15 = vld [vmem:[#allocation5 + $0x2c8] sm:$0xff]  ;;  %v521_v16 = vld [vmem:[#allocation5 + $0xc0] sm:$0xff]  ;;  %v520_v18 = vld [vmem:[#allocation5 + $0xb8] sm:$0xff] }
  0xbd   :  { %399 = vmatprep.subr.mxu0 %v294_v32  ;;  %470 = vmatprep.subr.mxu1 %v296_v33  ;;  %v585_v17 = vld [vmem:[#allocation5 + $0x2c0] sm:$0xff]  ;;  %v584_v19 = vld [vmem:[#allocation5 + $0x2b8] sm:$0xff]  ;;  %v519_v20 = vld [vmem:[#allocation5 + $0xb0] sm:$0xff] }
  0xbe   :  { %400 = vmatpush2.msra.mxu0 %v293_v34  ;;  %471 = vmatpush2.msra.mxu1 %v295_v35  ;;  %v583_v21 = vld [vmem:[#allocation5 + $0x2b0] sm:$0xff]  ;;  %v518_v22 = vld [vmem:[#allocation5 + $0xa8] sm:$0xff]  ;;  %v517_v24 = vld [vmem:[#allocation5 + $0xa0] sm:$0xff] }
  0xbf   :  { %401 = vmatprep.subr.mxu0 %v290_v36  ;;  %472 = vmatprep.subr.mxu1 %v292_v37  ;;  %v582_v23 = vld [vmem:[#allocation5 + $0x2a8] sm:$0xff]  ;;  %v581_v25 = vld [vmem:[#allocation5 + $0x2a0] sm:$0xff]  ;;  %v516_v26 = vld [vmem:[#allocation5 + $0x98] sm:$0xff] }
  0xc0   :  { %402 = vmatpush2.msra.mxu0 %v289_v38  ;;  %473 = vmatpush2.msra.mxu1 %v291_v39  ;;  %v580_v27 = vld [vmem:[#allocation5 + $0x298] sm:$0xff]  ;;  %v515_v28 = vld [vmem:[#allocation5 + $0x90] sm:$0xff]  ;;  %v514_v30 = vld [vmem:[#allocation5 + $0x88] sm:$0xff] }
  0xc1   :  { %403 = vmatprep.subr.mxu0 %v286_v40  ;;  %474 = vmatprep.subr.mxu1 %v288_v41  ;;  %v579_v29 = vld [vmem:[#allocation5 + $0x290] sm:$0xff]  ;;  %v578_v31 = vld [vmem:[#allocation5 + $0x288] sm:$0xff]  ;;  %v513_v32 = vld [vmem:[#allocation5 + $0x80] sm:$0xff] }
  0xc2   :  { %404 = vmatpush2.msra.mxu0 %v285_v42  ;;  %475 = vmatpush2.msra.mxu1 %v287_v43  ;;  %v577_v33 = vld [vmem:[#allocation5 + $0x280] sm:$0xff]  ;;  %v512_v34 = vld [vmem:[#allocation5 + $0x78] sm:$0xff]  ;;  %v511_v36 = vld [vmem:[#allocation5 + $0x70] sm:$0xff] }
  0xc3   :  { %405 = vmatprep.subr.mxu0 %v282_v44  ;;  %476 = vmatprep.subr.mxu1 %v284_v45  ;;  %v576_v35 = vld [vmem:[#allocation5 + $0x278] sm:$0xff]  ;;  %v575_v37 = vld [vmem:[#allocation5 + $0x270] sm:$0xff]  ;;  %v510_v38 = vld [vmem:[#allocation5 + $0x68] sm:$0xff] }
  0xc4   :  { %406 = vmatpush2.msra.mxu0 %v281_v46  ;;  %477 = vmatpush2.msra.mxu1 %v283_v47  ;;  %v574_v39 = vld [vmem:[#allocation5 + $0x268] sm:$0xff]  ;;  %v509_v40 = vld [vmem:[#allocation5 + $0x60] sm:$0xff]  ;;  %v508_v42 = vld [vmem:[#allocation5 + $0x58] sm:$0xff] }
  0xc5   :  { %407 = vmatprep.subr.mxu0 %v278_v48  ;;  %478 = vmatprep.subr.mxu1 %v280_v49  ;;  %v573_v41 = vld [vmem:[#allocation5 + $0x260] sm:$0xff]  ;;  %v572_v43 = vld [vmem:[#allocation5 + $0x258] sm:$0xff]  ;;  %v507_v44 = vld [vmem:[#allocation5 + $0x50] sm:$0xff] }
  0xc6   :  { %408 = vmatpush2.msra.mxu0 %v277_v50  ;;  %479 = vmatpush2.msra.mxu1 %v279_v51  ;;  %v571_v45 = vld [vmem:[#allocation5 + $0x250] sm:$0xff]  ;;  %v506_v46 = vld [vmem:[#allocation5 + $0x48] sm:$0xff]  ;;  %v505_v48 = vld [vmem:[#allocation5 + $0x40] sm:$0xff] }
  0xc7   :  { %409 = vmatprep.subr.mxu0 %v274_v52  ;;  %480 = vmatprep.subr.mxu1 %v276_v53  ;;  %v570_v47 = vld [vmem:[#allocation5 + $0x248] sm:$0xff]  ;;  %v569_v49 = vld [vmem:[#allocation5 + $0x240] sm:$0xff]  ;;  %v504_v50 = vld [vmem:[#allocation5 + $0x38] sm:$0xff] }
  0xc8   :  { %410 = vmatpush2.msra.mxu0 %v273_v54  ;;  %481 = vmatpush2.msra.mxu1 %v275_v55  ;;  %v568_v51 = vld [vmem:[#allocation5 + $0x238] sm:$0xff]  ;;  %v503_v52 = vld [vmem:[#allocation5 + $0x30] sm:$0xff]  ;;  %v502_v54 = vld [vmem:[#allocation5 + $0x28] sm:$0xff] }
  0xc9   :  { %411 = vmatprep.subr.mxu0 %v270_v56  ;;  %482 = vmatprep.subr.mxu1 %v272_v57  ;;  %v567_v53 = vld [vmem:[#allocation5 + $0x230] sm:$0xff]  ;;  %v566_v55 = vld [vmem:[#allocation5 + $0x228] sm:$0xff]  ;;  %v501_v56 = vld [vmem:[#allocation5 + $0x20] sm:$0xff] }
  0xca   :  { %412 = vmatpush2.msra.mxu0 %v269_v58  ;;  %483 = vmatpush2.msra.mxu1 %v271_v59  ;;  %v565_v57 = vld [vmem:[#allocation5 + $0x220] sm:$0xff]  ;;  %v500_v58 = vld [vmem:[#allocation5 + $0x18] sm:$0xff] }
  0xcb   :  { %413 = vmatprep.subr.mxu0 %v266_v60  ;;  %484 = vmatprep.subr.mxu1 %v268_v61  ;;  %v564_v59 = vld [vmem:[#allocation5 + $0x218] sm:$0xff]  ;;  %v499_v60 = vld [vmem:[#allocation5 + $0x10] sm:$0xff] }
  0xcc   :  { %414 = vmatpush2.msra.mxu0 %v265_v62  ;;  %415 = vmatprep.mubr.f32.mxu0 %v200_v63  ;;  %v563_v61 = vld [vmem:[#allocation5 + $0x210] sm:$0xff]  ;;  %v498_v62 = vld [vmem:[#allocation5 + $0x8] sm:$0xff] }
  0xcd   :  { %485 = vmatpush2.msra.mxu1 %v267_v0  ;;  %486 = vmatprep.mubr.f32.mxu1 %v200_v63  ;;  %v562_v63 = vld [vmem:[#allocation5 + $0x208] sm:$0xff]  ;;  %v497_v0 = vld [vmem:[#allocation5] sm:$0xff] }
  0xce   :  { %416 = vmatmul.mubr.f32.vlgmr.msra.gmra.mxu0 %v199_v1  ;;  %487 = vmatmul.mubr.f32.vlgmr.msra.gmra.mxu1 %v199_v1  ;;  %v561_v1 = vld [vmem:[#allocation5 + $0x200] sm:$0xff] }
  0xcf   :  { %637 = vmatprep.subr.mxu0 %v528_v2  ;;  %708 = vmatprep.subr.mxu1 %v592_v3  ;;  %v560_v2 = vld [vmem:[#allocation5 + $0x1f8] sm:$0xff] }
  0xd0   :  { %638 = vmatpush1.msra.mxu0 %v527_v4  ;;  %709 = vmatpush1.msra.mxu1 %v591_v5  ;;  %v624_v3 = vld [vmem:[#allocation5 + $0x3f8] sm:$0xff]  ;;  %v559_v4 = vld [vmem:[#allocation5 + $0x1f0] sm:$0xff] }
  0xd1   :  { %639 = vmatprep.subr.mxu0 %v526_v6  ;;  %710 = vmatprep.subr.mxu1 %v590_v7  ;;  %v623_v5 = vld [vmem:[#allocation5 + $0x3f0] sm:$0xff]  ;;  %v558_v6 = vld [vmem:[#allocation5 + $0x1e8] sm:$0xff] }
  0xd2   :  { %640 = vmatpush1.msra.mxu0 %v525_v8  ;;  %711 = vmatpush1.msra.mxu1 %v589_v9  ;;  %v622_v7 = vld [vmem:[#allocation5 + $0x3e8] sm:$0xff]  ;;  %v557_v8 = vld [vmem:[#allocation5 + $0x1e0] sm:$0xff] }
  0xd3   :  { %641 = vmatprep.subr.mxu0 %v524_v10  ;;  %712 = vmatprep.subr.mxu1 %v588_v11  ;;  %v621_v9 = vld [vmem:[#allocation5 + $0x3e0] sm:$0xff]  ;;  %v556_v10 = vld [vmem:[#allocation5 + $0x1d8] sm:$0xff] }
  0xd4   :  { %642 = vmatpush1.msra.mxu0 %v523_v12  ;;  %713 = vmatpush1.msra.mxu1 %v587_v13  ;;  %v620_v11 = vld [vmem:[#allocation5 + $0x3d8] sm:$0xff]  ;;  %v555_v12 = vld [vmem:[#allocation5 + $0x1d0] sm:$0xff] }
  0xd5   :  { %643 = vmatprep.subr.mxu0 %v522_v14  ;;  %714 = vmatprep.subr.mxu1 %v586_v15  ;;  %v619_v13 = vld [vmem:[#allocation5 + $0x3d0] sm:$0xff]  ;;  %v554_v14 = vld [vmem:[#allocation5 + $0x1c8] sm:$0xff] }
  0xd6   :  { %644 = vmatpush1.msra.mxu0 %v521_v16  ;;  %715 = vmatpush1.msra.mxu1 %v585_v17  ;;  %v618_v15 = vld [vmem:[#allocation5 + $0x3c8] sm:$0xff]  ;;  %v553_v16 = vld [vmem:[#allocation5 + $0x1c0] sm:$0xff] }
  0xd7   :  { %645 = vmatprep.subr.mxu0 %v520_v18  ;;  %716 = vmatprep.subr.mxu1 %v584_v19  ;;  %v617_v17 = vld [vmem:[#allocation5 + $0x3c0] sm:$0xff]  ;;  %v552_v18 = vld [vmem:[#allocation5 + $0x1b8] sm:$0xff] }
  0xd8   :  { %646 = vmatpush1.msra.mxu0 %v519_v20  ;;  %717 = vmatpush1.msra.mxu1 %v583_v21  ;;  %v616_v19 = vld [vmem:[#allocation5 + $0x3b8] sm:$0xff]  ;;  %v551_v20 = vld [vmem:[#allocation5 + $0x1b0] sm:$0xff] }
  0xd9   :  { %647 = vmatprep.subr.mxu0 %v518_v22  ;;  %718 = vmatprep.subr.mxu1 %v582_v23  ;;  %v615_v21 = vld [vmem:[#allocation5 + $0x3b0] sm:$0xff]  ;;  %v550_v22 = vld [vmem:[#allocation5 + $0x1a8] sm:$0xff] }
  0xda   :  { %648 = vmatpush1.msra.mxu0 %v517_v24  ;;  %719 = vmatpush1.msra.mxu1 %v581_v25  ;;  %v614_v23 = vld [vmem:[#allocation5 + $0x3a8] sm:$0xff]  ;;  %v549_v24 = vld [vmem:[#allocation5 + $0x1a0] sm:$0xff] }
  0xdb   :  { %649 = vmatprep.subr.mxu0 %v516_v26  ;;  %720 = vmatprep.subr.mxu1 %v580_v27  ;;  %v613_v25 = vld [vmem:[#allocation5 + $0x3a0] sm:$0xff]  ;;  %v548_v26 = vld [vmem:[#allocation5 + $0x198] sm:$0xff] }
  0xdc   :  { %650 = vmatpush1.msra.mxu0 %v515_v28  ;;  %721 = vmatpush1.msra.mxu1 %v579_v29  ;;  %v612_v27 = vld [vmem:[#allocation5 + $0x398] sm:$0xff]  ;;  %v547_v28 = vld [vmem:[#allocation5 + $0x190] sm:$0xff] }
  0xdd   :  { %651 = vmatprep.subr.mxu0 %v514_v30  ;;  %722 = vmatprep.subr.mxu1 %v578_v31  ;;  %v611_v29 = vld [vmem:[#allocation5 + $0x390] sm:$0xff]  ;;  %v546_v30 = vld [vmem:[#allocation5 + $0x188] sm:$0xff] }
  0xde   :  { %652 = vmatpush1.msra.mxu0 %v513_v32  ;;  %723 = vmatpush1.msra.mxu1 %v577_v33  ;;  %v610_v31 = vld [vmem:[#allocation5 + $0x388] sm:$0xff]  ;;  %v545_v32 = vld [vmem:[#allocation5 + $0x180] sm:$0xff] }
  0xdf   :  { %653 = vmatprep.subr.mxu0 %v512_v34  ;;  %724 = vmatprep.subr.mxu1 %v576_v35  ;;  %v609_v33 = vld [vmem:[#allocation5 + $0x380] sm:$0xff]  ;;  %v544_v34 = vld [vmem:[#allocation5 + $0x178] sm:$0xff] }
  0xe0   :  { %654 = vmatpush1.msra.mxu0 %v511_v36  ;;  %725 = vmatpush1.msra.mxu1 %v575_v37  ;;  %v608_v35 = vld [vmem:[#allocation5 + $0x378] sm:$0xff]  ;;  %v543_v36 = vld [vmem:[#allocation5 + $0x170] sm:$0xff] }
  0xe1   :  { %655 = vmatprep.subr.mxu0 %v510_v38  ;;  %726 = vmatprep.subr.mxu1 %v574_v39  ;;  %v607_v37 = vld [vmem:[#allocation5 + $0x370] sm:$0xff]  ;;  %v542_v38 = vld [vmem:[#allocation5 + $0x168] sm:$0xff] }
  0xe2   :  { %656 = vmatpush1.msra.mxu0 %v509_v40  ;;  %727 = vmatpush1.msra.mxu1 %v573_v41  ;;  %v606_v39 = vld [vmem:[#allocation5 + $0x368] sm:$0xff]  ;;  %v541_v40 = vld [vmem:[#allocation5 + $0x160] sm:$0xff] }
  0xe3   :  { %657 = vmatprep.subr.mxu0 %v508_v42  ;;  %728 = vmatprep.subr.mxu1 %v572_v43  ;;  %v605_v41 = vld [vmem:[#allocation5 + $0x360] sm:$0xff]  ;;  %v540_v42 = vld [vmem:[#allocation5 + $0x158] sm:$0xff] }
  0xe4   :  { %658 = vmatpush1.msra.mxu0 %v507_v44  ;;  %729 = vmatpush1.msra.mxu1 %v571_v45  ;;  %v604_v43 = vld [vmem:[#allocation5 + $0x358] sm:$0xff]  ;;  %v539_v44 = vld [vmem:[#allocation5 + $0x150] sm:$0xff] }
  0xe5   :  { %659 = vmatprep.subr.mxu0 %v506_v46  ;;  %730 = vmatprep.subr.mxu1 %v570_v47  ;;  %v603_v45 = vld [vmem:[#allocation5 + $0x350] sm:$0xff]  ;;  %v538_v46 = vld [vmem:[#allocation5 + $0x148] sm:$0xff] }
  0xe6   :  { %660 = vmatpush1.msra.mxu0 %v505_v48  ;;  %731 = vmatpush1.msra.mxu1 %v569_v49  ;;  %v602_v47 = vld [vmem:[#allocation5 + $0x348] sm:$0xff]  ;;  %v537_v48 = vld [vmem:[#allocation5 + $0x140] sm:$0xff] }
  0xe7   :  { %661 = vmatprep.subr.mxu0 %v504_v50  ;;  %732 = vmatprep.subr.mxu1 %v568_v51  ;;  %v601_v49 = vld [vmem:[#allocation5 + $0x340] sm:$0xff]  ;;  %v536_v50 = vld [vmem:[#allocation5 + $0x138] sm:$0xff] }
  0xe8   :  { %662 = vmatpush1.msra.mxu0 %v503_v52  ;;  %733 = vmatpush1.msra.mxu1 %v567_v53  ;;  %v600_v51 = vld [vmem:[#allocation5 + $0x338] sm:$0xff]  ;;  %v535_v52 = vld [vmem:[#allocation5 + $0x130] sm:$0xff] }
  0xe9   :  { %663 = vmatprep.subr.mxu0 %v502_v54  ;;  %734 = vmatprep.subr.mxu1 %v566_v55  ;;  %v599_v53 = vld [vmem:[#allocation5 + $0x330] sm:$0xff]  ;;  %v534_v54 = vld [vmem:[#allocation5 + $0x128] sm:$0xff] }
  0xea   :  { %664 = vmatpush1.msra.mxu0 %v501_v56  ;;  %735 = vmatpush1.msra.mxu1 %v565_v57  ;;  %v598_v55 = vld [vmem:[#allocation5 + $0x328] sm:$0xff]  ;;  %v533_v56 = vld [vmem:[#allocation5 + $0x120] sm:$0xff] }
  0xeb   :  { %665 = vmatprep.subr.mxu0 %v500_v58  ;;  %736 = vmatprep.subr.mxu1 %v564_v59  ;;  %v597_v57 = vld [vmem:[#allocation5 + $0x320] sm:$0xff]  ;;  %v532_v58 = vld [vmem:[#allocation5 + $0x118] sm:$0xff] }
  0xec   :  { %666 = vmatpush1.msra.mxu0 %v499_v60  ;;  %737 = vmatpush1.msra.mxu1 %v563_v61  ;;  %v596_v59 = vld [vmem:[#allocation5 + $0x318] sm:$0xff]  ;;  %v531_v60 = vld [vmem:[#allocation5 + $0x110] sm:$0xff] }
  0xed   :  { %667 = vmatprep.subr.mxu0 %v498_v62  ;;  %738 = vmatprep.subr.mxu1 %v562_v63  ;;  %v595_v61 = vld [vmem:[#allocation5 + $0x310] sm:$0xff]  ;;  %v530_v62 = vld [vmem:[#allocation5 + $0x108] sm:$0xff] }
  0xee   :  { %668 = vmatpush1.msra.mxu0 %v497_v0  ;;  %739 = vmatpush1.msra.mxu1 %v561_v1  ;;  %v594_v63 = vld [vmem:[#allocation5 + $0x308] sm:$0xff]  ;;  %v529_v0 = vld [vmem:[#allocation5 + $0x100] sm:$0xff] }
  0xef   :  { %669 = vmatprep.subr.mxu0 %v560_v2  ;;  %740 = vmatprep.subr.mxu1 %v624_v3  ;;  %v593_v1 = vld [vmem:[#allocation5 + $0x300] sm:$0xff] }
  0xf0   :  { %670 = vmatpush2.msra.mxu0 %v559_v4  ;;  %741 = vmatpush2.msra.mxu1 %v623_v5  ;;  %v812_v2 = vld [vmem:[#allocation8 + $0xf8] sm:$0xff]  ;;  %v331_v4 = vlaneseq }
  0xf1   :  { %671 = vmatprep.subr.mxu0 %v558_v6  ;;  %742 = vmatprep.subr.mxu1 %v622_v7  ;;  %v921_v3 = vld [vmem:[#allocation11 + $0xf8] sm:$0xff] }
  0xf2   :  { %672 = vmatpush2.msra.mxu0 %v557_v8  ;;  %743 = vmatpush2.msra.mxu1 %v621_v9  ;;  %v2325_v5 = vshrl.u32 %v331_v4, 7  ;;  %v329_v8 = vld [vmem:[%s2377_s3] sm:$0xf]  ;;  %v895_v4 = vld [vmem:[#allocation11 + $0x28] sm:$0xff] }
  0xf3   :  { %673 = vmatprep.subr.mxu0 %v556_v10  ;;  %744 = vmatprep.subr.mxu1 %v620_v11 }
  0xf4   :  { %674 = vmatpush2.msra.mxu0 %v555_v12  ;;  %745 = vmatpush2.msra.mxu1 %v619_v13  ;;  %v341_v6 = vsub.s32 2, %v2325_v5  ;;  %v2329_v7 = vsub.s32 0, %v2325_v5  ;;  %v2335_v9 = vsub.s32 1, %v2325_v5  ;;  %v345_v10 = vsub.s32 3, %v2325_v5 }
  0xf5   :  { %675 = vmatprep.subr.mxu0 %v554_v14  ;;  %746 = vmatprep.subr.mxu1 %v618_v15 }
  0xf6   :  { %676 = vmatpush2.msra.mxu0 %v553_v16  ;;  %747 = vmatpush2.msra.mxu1 %v617_v17  ;;  %v342_v11 = vrot.slane %v329_v8, %v341_v6  ;;  %v334_v12 = vrot.slane %v329_v8, %v2329_v7  ;;  %v338_v13 = vrot.slane %v329_v8, %v2335_v9 }
  0xf7   :  { %677 = vmatprep.subr.mxu0 %v552_v18  ;;  %748 = vmatprep.subr.mxu1 %v616_v19  ;;  %v346_v14 = vrot.slane %v329_v8, %v345_v10  ;;  %v801_v8 = vld [vmem:[#allocation8 + $0xa0] sm:$0xff] }
  0xf8   :  { %678 = vmatpush2.msra.mxu0 %v551_v20  ;;  %749 = vmatpush2.msra.mxu1 %v615_v21 }
  0xf9   :  { %679 = vmatprep.subr.mxu0 %v550_v22  ;;  %750 = vmatprep.subr.mxu1 %v614_v23 }
  0xfa   :  { %680 = vmatpush2.msra.mxu0 %v549_v24  ;;  %751 = vmatpush2.msra.mxu1 %v613_v25 }
  0xfb   :  { %681 = vmatprep.subr.mxu0 %v548_v26  ;;  %752 = vmatprep.subr.mxu1 %v612_v27  ;;  %v796_v27 = vld [vmem:[#allocation8 + $0x78] sm:$0xff] }
  0xfc   :  { %682 = vmatpush2.msra.mxu0 %v547_v28  ;;  %753 = vmatpush2.msra.mxu1 %v611_v29  ;;  %v905_v28 = vld [vmem:[#allocation11 + $0x78] sm:$0xff]  ;;  %v811_v29 = vld [vmem:[#allocation8 + $0xf0] sm:$0xff] }
  0xfd   :  { %683 = vmatprep.subr.mxu0 %v546_v30  ;;  %754 = vmatprep.subr.mxu1 %v610_v31  ;;  %v920_v30 = vld [vmem:[#allocation11 + $0xf0] sm:$0xff] }
  0xfe   :  { %684 = vmatpush2.msra.mxu0 %v545_v32  ;;  %755 = vmatpush2.msra.mxu1 %v609_v33  ;;  %v795_v31 = vld [vmem:[#allocation8 + $0x70] sm:$0xff]  ;;  %v810_v33 = vld [vmem:[#allocation8 + $0xe8] sm:$0xff] }
  0xff   :  { %685 = vmatprep.subr.mxu0 %v544_v34  ;;  %756 = vmatprep.subr.mxu1 %v608_v35  ;;  %v904_v32 = vld [vmem:[#allocation11 + $0x70] sm:$0xff]  ;;  %v919_v34 = vld [vmem:[#allocation11 + $0xe8] sm:$0xff] }
 0x100   :  { %686 = vmatpush2.msra.mxu0 %v543_v36  ;;  %757 = vmatpush2.msra.mxu1 %v607_v37  ;;  %v794_v35 = vld [vmem:[#allocation8 + $0x68] sm:$0xff]  ;;  %v809_v37 = vld [vmem:[#allocation8 + $0xe0] sm:$0xff] }
 0x101   :  { %687 = vmatprep.subr.mxu0 %v542_v38  ;;  %758 = vmatprep.subr.mxu1 %v606_v39  ;;  %v903_v36 = vld [vmem:[#allocation11 + $0x68] sm:$0xff]  ;;  %v918_v38 = vld [vmem:[#allocation11 + $0xe0] sm:$0xff] }
 0x102   :  { %688 = vmatpush2.msra.mxu0 %v541_v40  ;;  %759 = vmatpush2.msra.mxu1 %v605_v41  ;;  %v793_v39 = vld [vmem:[#allocation8 + $0x60] sm:$0xff]  ;;  %v808_v41 = vld [vmem:[#allocation8 + $0xd8] sm:$0xff] }
 0x103   :  { %689 = vmatprep.subr.mxu0 %v540_v42  ;;  %760 = vmatprep.subr.mxu1 %v604_v43  ;;  %v902_v40 = vld [vmem:[#allocation11 + $0x60] sm:$0xff]  ;;  %v917_v42 = vld [vmem:[#allocation11 + $0xd8] sm:$0xff] }
 0x104   :  { %690 = vmatpush2.msra.mxu0 %v539_v44  ;;  %761 = vmatpush2.msra.mxu1 %v603_v45  ;;  %v792_v43 = vld [vmem:[#allocation8 + $0x58] sm:$0xff]  ;;  %v807_v45 = vld [vmem:[#allocation8 + $0xd0] sm:$0xff] }
 0x105   :  { %691 = vmatprep.subr.mxu0 %v538_v46  ;;  %762 = vmatprep.subr.mxu1 %v602_v47  ;;  %v901_v44 = vld [vmem:[#allocation11 + $0x58] sm:$0xff]  ;;  %v916_v46 = vld [vmem:[#allocation11 + $0xd0] sm:$0xff] }
 0x106   :  { %692 = vmatpush2.msra.mxu0 %v537_v48  ;;  %763 = vmatpush2.msra.mxu1 %v601_v49  ;;  %v791_v47 = vld [vmem:[#allocation8 + $0x50] sm:$0xff]  ;;  %v806_v49 = vld [vmem:[#allocation8 + $0xc8] sm:$0xff] }
 0x107   :  { %693 = vmatprep.subr.mxu0 %v536_v50  ;;  %764 = vmatprep.subr.mxu1 %v600_v51  ;;  %v900_v48 = vld [vmem:[#allocation11 + $0x50] sm:$0xff]  ;;  %v915_v50 = vld [vmem:[#allocation11 + $0xc8] sm:$0xff] }
 0x108   :  { %694 = vmatpush2.msra.mxu0 %v535_v52  ;;  %765 = vmatpush2.msra.mxu1 %v599_v53  ;;  %v790_v51 = vld [vmem:[#allocation8 + $0x48] sm:$0xff]  ;;  %v805_v53 = vld [vmem:[#allocation8 + $0xc0] sm:$0xff] }
 0x109   :  { %695 = vmatprep.subr.mxu0 %v534_v54  ;;  %766 = vmatprep.subr.mxu1 %v598_v55  ;;  %v899_v52 = vld [vmem:[#allocation11 + $0x48] sm:$0xff]  ;;  %v914_v54 = vld [vmem:[#allocation11 + $0xc0] sm:$0xff] }
 0x10a   :  { %696 = vmatpush2.msra.mxu0 %v533_v56  ;;  %767 = vmatpush2.msra.mxu1 %v597_v57  ;;  %v789_v55 = vld [vmem:[#allocation8 + $0x40] sm:$0xff]  ;;  %v804_v57 = vld [vmem:[#allocation8 + $0xb8] sm:$0xff] }
 0x10b   :  { %697 = vmatprep.subr.mxu0 %v532_v58  ;;  %768 = vmatprep.subr.mxu1 %v596_v59  ;;  %v898_v56 = vld [vmem:[#allocation11 + $0x40] sm:$0xff]  ;;  %v913_v58 = vld [vmem:[#allocation11 + $0xb8] sm:$0xff] }
 0x10c   :  { %698 = vmatpush2.msra.mxu0 %v531_v60  ;;  %769 = vmatpush2.msra.mxu1 %v595_v61  ;;  %v788_v59 = vld [vmem:[#allocation8 + $0x38] sm:$0xff]  ;;  %v803_v61 = vld [vmem:[#allocation8 + $0xb0] sm:$0xff] }
 0x10d   :  { %699 = vmatprep.subr.mxu0 %v530_v62  ;;  %770 = vmatprep.subr.mxu1 %v594_v63  ;;  %v897_v60 = vld [vmem:[#allocation11 + $0x38] sm:$0xff]  ;;  %v912_v62 = vld [vmem:[#allocation11 + $0xb0] sm:$0xff] }
 0x10e   :  { %700 = vmatpush2.msra.mxu0 %v529_v0  ;;  %771 = vmatpush2.msra.mxu1 %v593_v1  ;;  %v787_v63 = vld [vmem:[#allocation8 + $0x30] sm:$0xff]  ;;  %v802_v1 = vld [vmem:[#allocation8 + $0xa8] sm:$0xff] }
 0x10f   :  { %1762 = vmatprep.subr.mxu0 %v812_v2  ;;  %1797 = vmatprep.subr.mxu1 %v921_v3  ;;  %v896_v0 = vld [vmem:[#allocation11 + $0x30] sm:$0xff]  ;;  %v911_v2 = vld [vmem:[#allocation11 + $0xa8] sm:$0xff] }
 0x110   :  { %v786_v3 = vld [vmem:[#allocation8 + $0x28] sm:$0xff] }
 0x18e   :  { %v417_v15 = vpop.f32.mrf.mxu0  ;;  %v488_v16 = vpop.f32.mrf.mxu1 }
 0x18f   :  { %v489_v17 = vadd.f32 %v488_v16, %v342_v11  ;;  %v418_v18 = vadd.f32 %v417_v15, %v334_v12  ;;  %v910_v11 = vld [vmem:[#allocation11 + $0xa0] sm:$0xff]  ;;  %v909_v15 = vld [vmem:[#allocation11 + $0x98] sm:$0xff] }
 0x190   :  { %v419_v19 = vpop.f32.mrf.mxu0  ;;  %v490_v20 = vpop.f32.mrf.mxu1  ;;  %v785_v12 = vld [vmem:[#allocation8 + $0x20] sm:$0xff]  ;;  %v784_v16 = vld [vmem:[#allocation8 + $0x18] sm:$0xff] }
 0x191   :  { %v420_v21 = vadd.f32 %v419_v19, %v338_v13  ;;  %v491_v22 = vadd.f32 %v490_v20, %v346_v14  ;;  %v495_v23 = vmax.f32 %v489_v17, 0.0  ;;  %v493_v26 = vmax.f32 %v418_v18, 0.0  ;;  %v894_v13 = vld [vmem:[#allocation11 + $0x20] sm:$0xff]  ;;  %v800_v14 = vld [vmem:[#allocation8 + $0x98] sm:$0xff]  ;;  %v799_v18 = vld [vmem:[#allocation8 + $0x90] sm:$0xff] }
 0x192   :  { %v893_v17 = vld [vmem:[#allocation11 + $0x18] sm:$0xff]  ;;  %v908_v19 = vld [vmem:[#allocation11 + $0x90] sm:$0xff] }
 0x193   :  { %v494_v24 = vmax.f32 %v420_v21, 0.0  ;;  %v496_v25 = vmax.f32 %v491_v22, 0.0  ;;  %v783_v20 = vld [vmem:[#allocation8 + $0x10] sm:$0xff]  ;;  %v798_v22 = vld [vmem:[#allocation8 + $0x88] sm:$0xff] }
 0x194   :  { %v892_v21 = vld [vmem:[#allocation11 + $0x10] sm:$0xff] }
 0x195   :  { %701 = vmatprep.mubr.f32.mxu0 %v494_v24  ;;  %772 = vmatprep.mubr.f32.mxu1 %v496_v25  ;;  %v782_v24 = vld [vmem:[#allocation8 + $0x8] sm:$0xff] }
 0x196   :  { %702 = vmatmul.mubr.f32.vlgmr.msra.gmra.mxu0 %v493_v26  ;;  %773 = vmatmul.mubr.f32.vlgmr.msra.gmra.mxu1 %v495_v23  ;;  %v907_v23 = vld [vmem:[#allocation11 + $0x88] sm:$0xff]  ;;  %v797_v26 = vld [vmem:[#allocation8 + $0x80] sm:$0xff] }
 0x197   :  { %1763 = vmatpush3.msra.mxu0 %v796_v27  ;;  %1798 = vmatpush3.msra.mxu1 %v905_v28  ;;  %v891_v25 = vld [vmem:[#allocation11 + $0x8] sm:$0xff]  ;;  %v906_v27 = vld [vmem:[#allocation11 + $0x80] sm:$0xff] }
 0x198   :  { %1764 = vmatprep.subr.mxu0 %v811_v29  ;;  %1799 = vmatprep.subr.mxu1 %v920_v30  ;;  %v781_v28 = vld [vmem:[#allocation8] sm:$0xff]  ;;  %v625_v30 = vld [vmem:[#allocation7] sm:$0x3] }
 0x199   :  { %1765 = vmatpush3.msra.mxu0 %v795_v31  ;;  %1800 = vmatpush3.msra.mxu1 %v904_v32  ;;  %v890_v29 = vld [vmem:[#allocation11] sm:$0xff]  ;;  %v630_v31 = vrot.slane %v625_v30, %v2329_v7  ;;  %v634_v32 = vrot.slane %v625_v30, %v2335_v9  ;;  %v1165_v30 = vld [vmem:[#allocation16 + $0x128] sm:$0xff] }
 0x19a   :  { %1766 = vmatprep.subr.mxu0 %v810_v33  ;;  %1801 = vmatprep.subr.mxu1 %v919_v34 }
 0x19b   :  { %1767 = vmatpush3.msra.mxu0 %v794_v35  ;;  %1802 = vmatpush3.msra.mxu1 %v903_v36 }
 0x19c   :  { %1768 = vmatprep.subr.mxu0 %v809_v37  ;;  %1803 = vmatprep.subr.mxu1 %v918_v38 }
 0x19d   :  { %1769 = vmatpush3.msra.mxu0 %v793_v39  ;;  %1804 = vmatpush3.msra.mxu1 %v902_v40 }
 0x19e   :  { %1770 = vmatprep.subr.mxu0 %v808_v41  ;;  %1805 = vmatprep.subr.mxu1 %v917_v42 }
 0x19f   :  { %1771 = vmatpush3.msra.mxu0 %v792_v43  ;;  %1806 = vmatpush3.msra.mxu1 %v901_v44  ;;  %v1042_v43 = vld [vmem:[#allocation13 + $0xf8] sm:$0xff]  ;;  %v1041_v44 = vld [vmem:[#allocation13 + $0xf0] sm:$0xff] }
 0x1a0   :  { %1772 = vmatprep.subr.mxu0 %v807_v45  ;;  %1807 = vmatprep.subr.mxu1 %v916_v46  ;;  %v1040_v45 = vld [vmem:[#allocation13 + $0xe8] sm:$0xff]  ;;  %v1039_v46 = vld [vmem:[#allocation13 + $0xe0] sm:$0xff] }
 0x1a1   :  { %1773 = vmatpush3.msra.mxu0 %v791_v47  ;;  %1808 = vmatpush3.msra.mxu1 %v900_v48  ;;  %v1038_v47 = vld [vmem:[#allocation13 + $0xd8] sm:$0xff]  ;;  %v1037_v48 = vld [vmem:[#allocation13 + $0xd0] sm:$0xff] }
 0x1a2   :  { %1774 = vmatprep.subr.mxu0 %v806_v49  ;;  %1809 = vmatprep.subr.mxu1 %v915_v50  ;;  %v1036_v49 = vld [vmem:[#allocation13 + $0xc8] sm:$0xff]  ;;  %v1035_v50 = vld [vmem:[#allocation13 + $0xc0] sm:$0xff] }
 0x1a3   :  { %1775 = vmatpush3.msra.mxu0 %v790_v51  ;;  %1810 = vmatpush3.msra.mxu1 %v899_v52  ;;  %v1034_v51 = vld [vmem:[#allocation13 + $0xb8] sm:$0xff]  ;;  %v1033_v52 = vld [vmem:[#allocation13 + $0xb0] sm:$0xff] }
 0x1a4   :  { %1776 = vmatprep.subr.mxu0 %v805_v53  ;;  %1811 = vmatprep.subr.mxu1 %v914_v54  ;;  %v1032_v53 = vld [vmem:[#allocation13 + $0xa8] sm:$0xff]  ;;  %v1031_v54 = vld [vmem:[#allocation13 + $0xa0] sm:$0xff] }
 0x1a5   :  { %1777 = vmatpush3.msra.mxu0 %v789_v55  ;;  %1812 = vmatpush3.msra.mxu1 %v898_v56  ;;  %v1030_v55 = vld [vmem:[#allocation13 + $0x98] sm:$0xff]  ;;  %v1029_v56 = vld [vmem:[#allocation13 + $0x90] sm:$0xff] }
 0x1a6   :  { %1778 = vmatprep.subr.mxu0 %v804_v57  ;;  %1813 = vmatprep.subr.mxu1 %v913_v58  ;;  %v1028_v57 = vld [vmem:[#allocation13 + $0x88] sm:$0xff]  ;;  %v1027_v58 = vld [vmem:[#allocation13 + $0x80] sm:$0xff] }
 0x1a7   :  { %1779 = vmatpush3.msra.mxu0 %v788_v59  ;;  %1814 = vmatpush3.msra.mxu1 %v897_v60  ;;  %v1026_v59 = vld [vmem:[#allocation13 + $0x78] sm:$0xff]  ;;  %v1025_v60 = vld [vmem:[#allocation13 + $0x70] sm:$0xff] }
 0x1a8   :  { %1780 = vmatprep.subr.mxu0 %v803_v61  ;;  %1815 = vmatprep.subr.mxu1 %v912_v62  ;;  %v1024_v61 = vld [vmem:[#allocation13 + $0x68] sm:$0xff]  ;;  %v2172_v62 = vmov 0.0  }
 0x1a9   :  { %1781 = vmatpush3.msra.mxu0 %v787_v63  ;;  %1816 = vmatpush3.msra.mxu1 %v896_v0  ;;  %v1023_v63 = vld [vmem:[#allocation13 + $0x60] sm:$0xff]  ;;  %v1022_v0 = vld [vmem:[#allocation13 + $0x58] sm:$0xff] }
 0x1aa   :  { %1782 = vmatprep.subr.mxu0 %v802_v1  ;;  %1817 = vmatprep.subr.mxu1 %v911_v2  ;;  %v1021_v1 = vld [vmem:[#allocation13 + $0x50] sm:$0xff]  ;;  %v1020_v2 = vld [vmem:[#allocation13 + $0x48] sm:$0xff] }
 0x1ab   :  { %1783 = vmatpush3.msra.mxu0 %v786_v3  ;;  %1818 = vmatpush3.msra.mxu1 %v895_v4  ;;  %v1019_v3 = vld [vmem:[#allocation13 + $0x40] sm:$0xff]  ;;  %v1018_v4 = vld [vmem:[#allocation13 + $0x38] sm:$0xff] }
 0x1ac   :  { %1784 = vmatprep.subr.mxu0 %v801_v8  ;;  %1819 = vmatprep.subr.mxu1 %v910_v11  ;;  %v1017_v8 = vld [vmem:[#allocation13 + $0x30] sm:$0xff]  ;;  %v1016_v11 = vld [vmem:[#allocation13 + $0x28] sm:$0xff] }
 0x1ad   :  { %1785 = vmatpush3.msra.mxu0 %v785_v12  ;;  %1820 = vmatpush3.msra.mxu1 %v894_v13  ;;  %v1015_v12 = vld [vmem:[#allocation13 + $0x20] sm:$0xff]  ;;  %v1014_v13 = vld [vmem:[#allocation13 + $0x18] sm:$0xff] }
 0x1ae   :  { %1786 = vmatprep.subr.mxu0 %v800_v14  ;;  %1821 = vmatprep.subr.mxu1 %v909_v15  ;;  %v1013_v14 = vld [vmem:[#allocation13 + $0x10] sm:$0xff]  ;;  %v1012_v15 = vld [vmem:[#allocation13 + $0x8] sm:$0xff] }
 0x1af   :  { %1787 = vmatpush3.msra.mxu0 %v784_v16  ;;  %1822 = vmatpush3.msra.mxu1 %v893_v17  ;;  %v1011_v16 = vld [vmem:[#allocation13] sm:$0xff]  ;;  %v1189_v17 = vld [vmem:[#allocation16 + $0x1e8] sm:$0xff] }
 0x1b0   :  { %1788 = vmatprep.subr.mxu0 %v799_v18  ;;  %1823 = vmatprep.subr.mxu1 %v908_v19  ;;  %v1191_v18 = vld [vmem:[#allocation16 + $0x1f8] sm:$0xff]  ;;  %v1188_v19 = vld [vmem:[#allocation16 + $0x1e0] sm:$0xff] }
 0x1b1   :  { %1789 = vmatpush3.msra.mxu0 %v783_v20  ;;  %1824 = vmatpush3.msra.mxu1 %v892_v21  ;;  %v1185_v20 = vld [vmem:[#allocation16 + $0x1c8] sm:$0xff]  ;;  %v1184_v21 = vld [vmem:[#allocation16 + $0x1c0] sm:$0xff] }
 0x1b2   :  { %1790 = vmatprep.subr.mxu0 %v798_v22  ;;  %1825 = vmatprep.subr.mxu1 %v907_v23  ;;  %v1181_v22 = vld [vmem:[#allocation16 + $0x1a8] sm:$0xff]  ;;  %v1180_v23 = vld [vmem:[#allocation16 + $0x1a0] sm:$0xff] }
 0x1b3   :  { %1791 = vmatpush3.msra.mxu0 %v782_v24  ;;  %1826 = vmatpush3.msra.mxu1 %v891_v25  ;;  %v1177_v24 = vld [vmem:[#allocation16 + $0x188] sm:$0xff]  ;;  %v1176_v25 = vld [vmem:[#allocation16 + $0x180] sm:$0xff] }
 0x1b4   :  { %1792 = vmatprep.subr.mxu0 %v797_v26  ;;  %1827 = vmatprep.subr.mxu1 %v906_v27  ;;  %v1173_v26 = vld [vmem:[#allocation16 + $0x168] sm:$0xff]  ;;  %v1172_v27 = vld [vmem:[#allocation16 + $0x160] sm:$0xff] }
 0x1b5   :  { %1793 = vmatpush3.msra.mxu0 %v781_v28  ;;  %1828 = vmatpush3.msra.mxu1 %v890_v29  ;;  %v1169_v28 = vld [vmem:[#allocation16 + $0x148] sm:$0xff]  ;;  %v1168_v29 = vld [vmem:[#allocation16 + $0x140] sm:$0xff] }
 0x1b6   :  { %1055 = vmatprep.subr.mxu0 %v1042_v43  ;;  %1278 = vmatprep.subr.mxu1 %v1189_v17  ;;  %v1140_v43 = vld [vmem:[#allocation16 + $0x60] sm:$0xff]  ;;  %v1759_v17 = vld [vmem:[#allocation10] ss:$0 sm:$0xff] }
 0x256   :  { %v703_v33 = vpop.f32.mrf.mxu0  ;;  %v774_v34 = vpop.f32.mrf.mxu1 }
 0x257   :  { %v704_v35 = vadd.f32 %v703_v33, %v630_v31  ;;  %v1164_v31 = vld [vmem:[#allocation16 + $0x120] sm:$0xff] }
 0x258   :  { %v705_v36 = vpop.f32.mrf.mxu0  ;;  %v776_v39 = vpop.f32.mrf.mxu1  ;;  %v1160_v33 = vld [vmem:[#allocation16 + $0x100] sm:$0xff] }
 0x259   :  { %v706_v37 = vadd.f32 %v705_v36, %v634_v32  ;;  %v775_v38 = vadd.f32 %v774_v34, %v704_v35  ;;  %v1161_v32 = vld [vmem:[#allocation16 + $0x108] sm:$0xff]  ;;  %v1156_v35 = vld [vmem:[#allocation16 + $0xe0] sm:$0xff] }
 0x25a   :  { %v1157_v34 = vld [vmem:[#allocation16 + $0xe8] sm:$0xff] }
 0x25b   :  { %v777_v40 = vadd.f32 %v776_v39, %v706_v37  ;;  %v779_v42 = vmax.f32 %v775_v38, 0.0  ;;  %v1153_v36 = vld [vmem:[#allocation16 + $0xc8] sm:$0xff]  ;;  %v1152_v37 = vld [vmem:[#allocation16 + $0xc0] sm:$0xff] }
 0x25c   :  { %v1149_v38 = vld [vmem:[#allocation16 + $0xa8] sm:$0xff]  ;;  %v1148_v39 = vld [vmem:[#allocation16 + $0xa0] sm:$0xff] }
 0x25d   :  { %v780_v41 = vmax.f32 %v777_v40, 0.0  ;;  %v1145_v40 = vld [vmem:[#allocation16 + $0x88] sm:$0xff] }
 0x25f   :  { %884 = vmatprep.mubr.f32.mxu0 %v780_v41  ;;  %993 = vmatprep.mubr.f32.mxu1 %v780_v41  ;;  %v1144_v41 = vld [vmem:[#allocation16 + $0x80] sm:$0xff] }
 0x260   :  { %885 = vmatmul.mubr.f32.vlgmr.msra.gmra.mxu0 %v779_v42  ;;  %994 = vmatmul.mubr.f32.vlgmr.msra.gmra.mxu1 %v779_v42  ;;  %v1141_v42 = vld [vmem:[#allocation16 + $0x68] sm:$0xff] }
 0x261   :  { %1056 = vmatpush1.msra.mxu0 %v1041_v44  ;;  %1119 = vmatprep.mubr.f32.mxu0 %v2172_v62  ;;  %v1137_v44 = vld [vmem:[#allocation16 + $0x48] sm:$0xff] }
 0x262   :  { %1057 = vmatprep.subr.mxu0 %v1040_v45  ;;  %1279 = vmatpush1.msra.mxu1 %v1188_v19  ;;  %v1136_v45 = vld [vmem:[#allocation16 + $0x40] sm:$0xff]  ;;  %v1229_v62 = vld [vmem:[#allocation16 + $0x328] sm:$0xff]  ;;  %v1760_v19 = vld [vmem:[%s2383_s9] ss:$0 sm:$0xff] }
 0x263   :  { %1058 = vmatpush1.msra.mxu0 %v1039_v46  ;;  %1280 = vmatprep.subr.mxu1 %v1185_v20  ;;  %v1133_v46 = vld [vmem:[#allocation16 + $0x28] sm:$0xff] }
 0x264   :  { %1059 = vmatprep.subr.mxu0 %v1038_v47  ;;  %1281 = vmatpush1.msra.mxu1 %v1184_v21  ;;  %v1132_v47 = vld [vmem:[#allocation16 + $0x20] sm:$0xff] }
 0x265   :  { %1060 = vmatpush1.msra.mxu0 %v1037_v48  ;;  %1282 = vmatprep.subr.mxu1 %v1181_v22  ;;  %v1129_v48 = vld [vmem:[#allocation16 + $0x8] sm:$0xff] }
 0x266   :  { %1061 = vmatprep.subr.mxu0 %v1036_v49  ;;  %1283 = vmatpush1.msra.mxu1 %v1180_v23  ;;  %v1128_v49 = vld [vmem:[#allocation16] sm:$0xff] }
 0x267   :  { %1062 = vmatpush1.msra.mxu0 %v1035_v50  ;;  %1284 = vmatprep.subr.mxu1 %v1177_v24  ;;  %v1253_v50 = vld [vmem:[#allocation16 + $0x3e8] sm:$0xff] }
 0x268   :  { %1063 = vmatprep.subr.mxu0 %v1034_v51  ;;  %1285 = vmatpush1.msra.mxu1 %v1176_v25  ;;  %v1252_v51 = vld [vmem:[#allocation16 + $0x3e0] sm:$0xff] }
 0x269   :  { %1064 = vmatpush1.msra.mxu0 %v1033_v52  ;;  %1286 = vmatprep.subr.mxu1 %v1173_v26  ;;  %v1249_v52 = vld [vmem:[#allocation16 + $0x3c8] sm:$0xff] }
 0x26a   :  { %1065 = vmatprep.subr.mxu0 %v1032_v53  ;;  %1287 = vmatpush1.msra.mxu1 %v1172_v27  ;;  %v1248_v53 = vld [vmem:[#allocation16 + $0x3c0] sm:$0xff] }
 0x26b   :  { %1066 = vmatpush1.msra.mxu0 %v1031_v54  ;;  %1288 = vmatprep.subr.mxu1 %v1169_v28  ;;  %v1245_v54 = vld [vmem:[#allocation16 + $0x3a8] sm:$0xff] }
 0x26c   :  { %1067 = vmatprep.subr.mxu0 %v1030_v55  ;;  %1289 = vmatpush1.msra.mxu1 %v1168_v29  ;;  %v1244_v55 = vld [vmem:[#allocation16 + $0x3a0] sm:$0xff] }
 0x26d   :  { %1068 = vmatpush1.msra.mxu0 %v1029_v56  ;;  %1290 = vmatprep.subr.mxu1 %v1165_v30  ;;  %v1241_v56 = vld [vmem:[#allocation16 + $0x388] sm:$0xff] }
 0x26e   :  { %1069 = vmatprep.subr.mxu0 %v1028_v57  ;;  %1291 = vmatpush1.msra.mxu1 %v1164_v31  ;;  %v1240_v57 = vld [vmem:[#allocation16 + $0x380] sm:$0xff] }
 0x26f   :  { %1070 = vmatpush1.msra.mxu0 %v1027_v58  ;;  %1292 = vmatprep.subr.mxu1 %v1161_v32  ;;  %v1237_v58 = vld [vmem:[#allocation16 + $0x368] sm:$0xff]  ;;  %v1008_v31 = vld [vmem:[%s2399_s2] sm:$0xff] }
 0x270   :  { %1071 = vmatprep.subr.mxu0 %v1026_v59  ;;  %1293 = vmatpush1.msra.mxu1 %v1160_v33  ;;  %v1236_v59 = vld [vmem:[#allocation16 + $0x360] sm:$0xff] }
 0x271   :  { %1072 = vmatpush1.msra.mxu0 %v1025_v60  ;;  %1294 = vmatprep.subr.mxu1 %v1157_v34  ;;  %v1233_v60 = vld [vmem:[#allocation16 + $0x348] sm:$0xff] }
 0x272   :  { %1073 = vmatprep.subr.mxu0 %v1024_v61  ;;  %1295 = vmatpush1.msra.mxu1 %v1156_v35  ;;  %v1232_v61 = vld [vmem:[#allocation16 + $0x340] sm:$0xff]  ;;  %v1190_v35 = vld [vmem:[#allocation16 + $0x1f0] sm:$0xff] }
 0x273   :  { %1074 = vmatpush1.msra.mxu0 %v1023_v63  ;;  %1296 = vmatprep.subr.mxu1 %v1153_v36  ;;  %v1228_v63 = vld [vmem:[#allocation16 + $0x320] sm:$0xff]  ;;  %v1187_v36 = vld [vmem:[#allocation16 + $0x1d8] sm:$0xff] }
 0x274   :  { %1075 = vmatprep.subr.mxu0 %v1022_v0  ;;  %1297 = vmatpush1.msra.mxu1 %v1152_v37  ;;  %v1225_v0 = vld [vmem:[#allocation16 + $0x308] sm:$0xff]  ;;  %v1186_v37 = vld [vmem:[#allocation16 + $0x1d0] sm:$0xff] }
 0x275   :  { %1076 = vmatpush1.msra.mxu0 %v1021_v1  ;;  %1298 = vmatprep.subr.mxu1 %v1149_v38  ;;  %v1224_v1 = vld [vmem:[#allocation16 + $0x300] sm:$0xff]  ;;  %v1183_v38 = vld [vmem:[#allocation16 + $0x1b8] sm:$0xff] }
 0x276   :  { %1077 = vmatprep.subr.mxu0 %v1020_v2  ;;  %1299 = vmatpush1.msra.mxu1 %v1148_v39  ;;  %v1221_v2 = vld [vmem:[#allocation16 + $0x2e8] sm:$0xff]  ;;  %v1182_v39 = vld [vmem:[#allocation16 + $0x1b0] sm:$0xff] }
 0x277   :  { %1078 = vmatpush1.msra.mxu0 %v1019_v3  ;;  %1300 = vmatprep.subr.mxu1 %v1145_v40  ;;  %v1220_v3 = vld [vmem:[#allocation16 + $0x2e0] sm:$0xff]  ;;  %v1179_v40 = vld [vmem:[#allocation16 + $0x198] sm:$0xff] }
 0x278   :  { %1079 = vmatprep.subr.mxu0 %v1018_v4  ;;  %1301 = vmatpush1.msra.mxu1 %v1144_v41  ;;  %v1217_v4 = vld [vmem:[#allocation16 + $0x2c8] sm:$0xff]  ;;  %v1178_v41 = vld [vmem:[#allocation16 + $0x190] sm:$0xff] }
 0x279   :  { %1080 = vmatpush1.msra.mxu0 %v1017_v8  ;;  %1302 = vmatprep.subr.mxu1 %v1141_v42  ;;  %v1216_v8 = vld [vmem:[#allocation16 + $0x2c0] sm:$0xff]  ;;  %v1175_v42 = vld [vmem:[#allocation16 + $0x178] sm:$0xff] }
 0x27a   :  { %1081 = vmatprep.subr.mxu0 %v1016_v11  ;;  %1303 = vmatpush1.msra.mxu1 %v1140_v43  ;;  %v1213_v11 = vld [vmem:[#allocation16 + $0x2a8] sm:$0xff]  ;;  %v1174_v43 = vld [vmem:[#allocation16 + $0x170] sm:$0xff] }
 0x27b   :  { %1082 = vmatpush1.msra.mxu0 %v1015_v12  ;;  %1304 = vmatprep.subr.mxu1 %v1137_v44  ;;  %v1212_v12 = vld [vmem:[#allocation16 + $0x2a0] sm:$0xff]  ;;  %v1171_v44 = vld [vmem:[#allocation16 + $0x158] sm:$0xff] }
 0x27c   :  { %1083 = vmatprep.subr.mxu0 %v1014_v13  ;;  %1305 = vmatpush1.msra.mxu1 %v1136_v45  ;;  %v1209_v13 = vld [vmem:[#allocation16 + $0x288] sm:$0xff]  ;;  %v1170_v45 = vld [vmem:[#allocation16 + $0x150] sm:$0xff] }
 0x27d   :  { %1084 = vmatpush1.msra.mxu0 %v1013_v14  ;;  %1306 = vmatprep.subr.mxu1 %v1133_v46  ;;  %v1208_v14 = vld [vmem:[#allocation16 + $0x280] sm:$0xff]  ;;  %v1167_v46 = vld [vmem:[#allocation16 + $0x138] sm:$0xff] }
 0x27e   :  { %1085 = vmatprep.subr.mxu0 %v1012_v15  ;;  %1307 = vmatpush1.msra.mxu1 %v1132_v47  ;;  %v1166_v47 = vld [vmem:[#allocation16 + $0x130] sm:$0xff] }
 0x27f   :  { %1086 = vmatpush1.msra.mxu0 %v1011_v16  ;;  %1308 = vmatprep.subr.mxu1 %v1129_v48  ;;  %v1163_v48 = vld [vmem:[#allocation16 + $0x118] sm:$0xff] }
 0x280   :  { %1349 = vmatprep.subr.mxu0 %v1191_v18  ;;  %1309 = vmatpush1.msra.mxu1 %v1128_v49  ;;  %v1162_v49 = vld [vmem:[#allocation16 + $0x110] sm:$0xff] }
 0x281   :  { %1310 = vmatprep.subr.mxu1 %v1253_v50  ;;  %v1159_v50 = vld [vmem:[#allocation16 + $0xf8] sm:$0xff] }
 0x282   :  { %1311 = vmatpush2.msra.mxu1 %v1252_v51  ;;  %v1158_v51 = vld [vmem:[#allocation16 + $0xf0] sm:$0xff] }
 0x283   :  { %1312 = vmatprep.subr.mxu1 %v1249_v52  ;;  %v1155_v52 = vld [vmem:[#allocation16 + $0xd8] sm:$0xff] }
 0x284   :  { %1313 = vmatpush2.msra.mxu1 %v1248_v53  ;;  %v1154_v53 = vld [vmem:[#allocation16 + $0xd0] sm:$0xff] }
 0x285   :  { %1314 = vmatprep.subr.mxu1 %v1245_v54  ;;  %v1151_v54 = vld [vmem:[#allocation16 + $0xb8] sm:$0xff] }
 0x286   :  { %1315 = vmatpush2.msra.mxu1 %v1244_v55  ;;  %v1150_v55 = vld [vmem:[#allocation16 + $0xb0] sm:$0xff] }
 0x287   :  { %1316 = vmatprep.subr.mxu1 %v1241_v56  ;;  %v1147_v56 = vld [vmem:[#allocation16 + $0x98] sm:$0xff] }
 0x288   :  { %1317 = vmatpush2.msra.mxu1 %v1240_v57  ;;  %v1146_v57 = vld [vmem:[#allocation16 + $0x90] sm:$0xff] }
 0x289   :  { %1318 = vmatprep.subr.mxu1 %v1237_v58  ;;  %v1143_v58 = vld [vmem:[#allocation16 + $0x78] sm:$0xff] }
 0x28a   :  { %1319 = vmatpush2.msra.mxu1 %v1236_v59  ;;  %v1142_v59 = vld [vmem:[#allocation16 + $0x70] sm:$0xff] }
 0x28b   :  { %1320 = vmatprep.subr.mxu1 %v1233_v60  ;;  %v1139_v60 = vld [vmem:[#allocation16 + $0x58] sm:$0xff] }
 0x28c   :  { %1321 = vmatpush2.msra.mxu1 %v1232_v61  ;;  %v1138_v61 = vld [vmem:[#allocation16 + $0x50] sm:$0xff] }
 0x28d   :  { %1322 = vmatprep.subr.mxu1 %v1229_v62  ;;  %v1135_v62 = vld [vmem:[#allocation16 + $0x38] sm:$0xff] }
 0x28e   :  { %1323 = vmatpush2.msra.mxu1 %v1228_v63  ;;  %v1134_v63 = vld [vmem:[#allocation16 + $0x30] sm:$0xff] }
 0x28f   :  { %1324 = vmatprep.subr.mxu1 %v1225_v0  ;;  %v1131_v0 = vld [vmem:[#allocation16 + $0x18] sm:$0xff] }
 0x290   :  { %1325 = vmatpush2.msra.mxu1 %v1224_v1  ;;  %v1130_v1 = vld [vmem:[#allocation16 + $0x10] sm:$0xff] }
 0x291   :  { %1326 = vmatprep.subr.mxu1 %v1221_v2  ;;  %v1255_v2 = vld [vmem:[#allocation16 + $0x3f8] sm:$0xff] }
 0x292   :  { %1327 = vmatpush2.msra.mxu1 %v1220_v3  ;;  %v1254_v3 = vld [vmem:[#allocation16 + $0x3f0] sm:$0xff] }
 0x293   :  { %1328 = vmatprep.subr.mxu1 %v1217_v4  ;;  %v1251_v4 = vld [vmem:[#allocation16 + $0x3d8] sm:$0xff] }
 0x294   :  { %1329 = vmatpush2.msra.mxu1 %v1216_v8  ;;  %v1250_v8 = vld [vmem:[#allocation16 + $0x3d0] sm:$0xff] }
 0x295   :  { %1330 = vmatprep.subr.mxu1 %v1213_v11  ;;  %v1247_v11 = vld [vmem:[#allocation16 + $0x3b8] sm:$0xff] }
 0x296   :  { %1331 = vmatpush2.msra.mxu1 %v1212_v12  ;;  %v1246_v12 = vld [vmem:[#allocation16 + $0x3b0] sm:$0xff] }
 0x297   :  { %1332 = vmatprep.subr.mxu1 %v1209_v13  ;;  %v1243_v13 = vld [vmem:[#allocation16 + $0x398] sm:$0xff] }
 0x298   :  { %1333 = vmatpush2.msra.mxu1 %v1208_v14  ;;  %v1242_v14 = vld [vmem:[#allocation16 + $0x390] sm:$0xff] }
 0x320   :  { %v1794_v15 = vpop.f32.mrf.mxu0  ;;  %v1829_v16 = vpop.f32.mrf.mxu1 }
 0x322   :  { %v1795_v18 = vpop.f32.mrf.mxu0  ;;  %v1830_v20 = vpop.f32.mrf.mxu1 }
 0x323   :  { %v1796_v21 = vadd.f32 %v1795_v18, %v1794_v15  ;;  %v1831_v22 = vadd.f32 %v1830_v20, %v1829_v16  ;;  %v1239_v15 = vld [vmem:[#allocation16 + $0x378] sm:$0xff]  ;;  %v1238_v16 = vld [vmem:[#allocation16 + $0x370] sm:$0xff] }
 0x324   :  { %v1234_v18 = vld [vmem:[#allocation16 + $0x350] sm:$0xff] }
 0x325   :  { %v887_v23 = vadd.f32 %v1796_v21, %v1759_v17  ;;  %v996_v24 = vadd.f32 %v1831_v22, %v1760_v19  ;;  %v1235_v17 = vld [vmem:[#allocation16 + $0x358] sm:$0xff]  ;;  %v1230_v20 = vld [vmem:[#allocation16 + $0x330] sm:$0xff] }
 0x326   :  { %v1231_v19 = vld [vmem:[#allocation16 + $0x338] sm:$0xff]  ;;  %v1226_v22 = vld [vmem:[#allocation16 + $0x310] sm:$0xff] }
 0x327   :  { %1710 = vst [vmem:[#allocation21] sm:$0xff] %v887_v23  ;;  %v1761_v25 = vmul.f32 -1.442695, %v996_v24  ;;  %v1227_v21 = vld [vmem:[#allocation16 + $0x318] sm:$0xff]  ;;  %v1222_v24 = vld [vmem:[#allocation16 + $0x2f0] sm:$0xff] }
 0x329   :  { %1853 = vpow2.f32 %v1761_v25  ;;  %v1219_v25 = vld [vmem:[#allocation16 + $0x2d8] sm:$0xff] }
 0x336   :  { %v1854_v26 = vpop.eup %1853 }
 0x337   :  { %v1002_v27 = vadd.f32 1.0, %v1854_v26  ;;  %v1218_v26 = vld [vmem:[#allocation16 + $0x2d0] sm:$0xff] }
 0x339   :  { %1855 = vrcp.f32 %v1002_v27  ;;  %v1215_v27 = vld [vmem:[#allocation16 + $0x2b8] sm:$0xff] }
 0x346   :  { %v1856_v28 = vpop.eup %1855 }
 0x347   :  { %v1005_v29 = vmul.f32 0.5, %v1856_v28  ;;  %1711 = vst [vmem:[#allocation23] sm:$0xff] %v1856_v28  ;;  %v1214_v28 = vld [vmem:[#allocation16 + $0x2b0] sm:$0xff] }
 0x349   :  { %v1006_v30 = vmul.f32 1.442695, %v1005_v29  ;;  %v1211_v29 = vld [vmem:[#allocation16 + $0x298] sm:$0xff] }
 0x34b   :  { %1857 = vpow2.f32 %v1006_v30  ;;  %v1210_v30 = vld [vmem:[#allocation16 + $0x290] sm:$0xff] }
 0x358   :  { %v1858_v32 = vpop.eup %1857 }
 0x359   :  { %v1009_v33 = vmul.f32 %v1858_v32, %v1008_v31  ;;  %v1205_v31 = vld [vmem:[#allocation16 + $0x268] sm:$0xff]  ;;  %v1207_v32 = vld [vmem:[#allocation16 + $0x278] sm:$0xff] }
 0x35a   :  { %1334 = vmatprep.subr.mxu1 %v1205_v31  ;;  %v1438_v31 = vld [vmem:[#allocation17 + $0x70] sm:$0xff] }
 0x35b   :  { %v1010_v34 = vadd.f32 %v1009_v33, %v887_v23  ;;  %v1223_v23 = vld [vmem:[#allocation16 + $0x2f8] sm:$0xff]  ;;  %v1204_v33 = vld [vmem:[#allocation16 + $0x260] sm:$0xff] }
 0x35c   :  { %1335 = vmatpush2.msra.mxu1 %v1204_v33  ;;  %v1437_v33 = vld [vmem:[#allocation17 + $0x68] sm:$0xff] }
 0x35d   :  { %1120 = vmatmul.mubr.f32.vlgmr.msra.gmra.mxu0 %v1010_v34  ;;  %v1206_v34 = vld [vmem:[#allocation16 + $0x270] sm:$0xff] }
 0x35e   :  { %1350 = vmatpush1.msra.mxu0 %v1190_v35  ;;  %v1201_v35 = vld [vmem:[#allocation16 + $0x248] sm:$0xff] }
 0x35f   :  { %1351 = vmatprep.subr.mxu0 %v1187_v36  ;;  %v1203_v36 = vld [vmem:[#allocation16 + $0x258] sm:$0xff]  ;;  %1336 = vmatprep.subr.mxu1 %v1201_v35  ;;  %v1436_v35 = vld [vmem:[#allocation17 + $0x60] sm:$0xff] }
 0x360   :  { %1352 = vmatpush1.msra.mxu0 %v1186_v37  ;;  %v1200_v37 = vld [vmem:[#allocation16 + $0x240] sm:$0xff] }
 0x361   :  { %1353 = vmatprep.subr.mxu0 %v1183_v38  ;;  %v1202_v38 = vld [vmem:[#allocation16 + $0x250] sm:$0xff]  ;;  %1337 = vmatpush2.msra.mxu1 %v1200_v37  ;;  %v1435_v37 = vld [vmem:[#allocation17 + $0x58] sm:$0xff] }
 0x362   :  { %1354 = vmatpush1.msra.mxu0 %v1182_v39  ;;  %v1197_v39 = vld [vmem:[#allocation16 + $0x228] sm:$0xff] }
 0x363   :  { %1355 = vmatprep.subr.mxu0 %v1179_v40  ;;  %v1199_v40 = vld [vmem:[#allocation16 + $0x238] sm:$0xff]  ;;  %1338 = vmatprep.subr.mxu1 %v1197_v39  ;;  %v1434_v39 = vld [vmem:[#allocation17 + $0x50] sm:$0xff] }
 0x364   :  { %1356 = vmatpush1.msra.mxu0 %v1178_v41  ;;  %v1196_v41 = vld [vmem:[#allocation16 + $0x220] sm:$0xff] }
 0x365   :  { %1357 = vmatprep.subr.mxu0 %v1175_v42  ;;  %v1198_v42 = vld [vmem:[#allocation16 + $0x230] sm:$0xff]  ;;  %1339 = vmatpush2.msra.mxu1 %v1196_v41  ;;  %v1433_v41 = vld [vmem:[#allocation17 + $0x48] sm:$0xff] }
 0x366   :  { %1358 = vmatpush1.msra.mxu0 %v1174_v43  ;;  %v1193_v43 = vld [vmem:[#allocation16 + $0x208] sm:$0xff] }
 0x367   :  { %1359 = vmatprep.subr.mxu0 %v1171_v44  ;;  %v1195_v44 = vld [vmem:[#allocation16 + $0x218] sm:$0xff]  ;;  %1340 = vmatprep.subr.mxu1 %v1193_v43  ;;  %v1432_v43 = vld [vmem:[#allocation17 + $0x40] sm:$0xff] }
 0x368   :  { %1360 = vmatpush1.msra.mxu0 %v1170_v45  ;;  %v1192_v45 = vld [vmem:[#allocation16 + $0x200] sm:$0xff] }
 0x369   :  { %1361 = vmatprep.subr.mxu0 %v1167_v46  ;;  %v1194_v46 = vld [vmem:[#allocation16 + $0x210] sm:$0xff]  ;;  %1341 = vmatpush2.msra.mxu1 %v1192_v45  ;;  %v1431_v45 = vld [vmem:[#allocation17 + $0x38] sm:$0xff] }
 0x36a   :  { %1362 = vmatpush1.msra.mxu0 %v1166_v47  ;;  %v1455_v47 = vld [vmem:[#allocation17 + $0xf8] sm:$0xff] }
 0x36b   :  { %1363 = vmatprep.subr.mxu0 %v1163_v48  ;;  %v1519_v48 = vld [vmem:[#allocation17 + $0x2f8] sm:$0xff]  ;;  %1564 = vmatprep.subr.mxu1 %v1455_v47  ;;  %v1430_v47 = vld [vmem:[#allocation17 + $0x30] sm:$0xff] }
 0x36c   :  { %1364 = vmatpush1.msra.mxu0 %v1162_v49  ;;  %v1043_v49 = vld [vmem:[#allocation14] sm:$0x3] }
 0x36d   :  { %1365 = vmatprep.subr.mxu0 %v1159_v50  ;;  %v1048_v50 = vrot.slane %v1043_v49, %v2329_v7 }
 0x36e   :  { %1366 = vmatpush1.msra.mxu0 %v1158_v51  ;;  %v1052_v51 = vrot.slane %v1043_v49, %v2335_v9  ;;  %v1429_v49 = vld [vmem:[#allocation17 + $0x28] sm:$0xff] }
 0x36f   :  { %1367 = vmatprep.subr.mxu0 %v1155_v52 }
 0x370   :  { %1368 = vmatpush1.msra.mxu0 %v1154_v53 }
 0x371   :  { %1369 = vmatprep.subr.mxu0 %v1151_v54 }
 0x372   :  { %1370 = vmatpush1.msra.mxu0 %v1150_v55 }
 0x373   :  { %1371 = vmatprep.subr.mxu0 %v1147_v56 }
 0x374   :  { %1372 = vmatpush1.msra.mxu0 %v1146_v57 }
 0x375   :  { %1373 = vmatprep.subr.mxu0 %v1143_v58  ;;  %v1454_v58 = vld [vmem:[#allocation17 + $0xf0] sm:$0xff] }
 0x376   :  { %1374 = vmatpush1.msra.mxu0 %v1142_v59  ;;  %v1518_v59 = vld [vmem:[#allocation17 + $0x2f0] sm:$0xff] }
 0x377   :  { %1375 = vmatprep.subr.mxu0 %v1139_v60  ;;  %v1453_v60 = vld [vmem:[#allocation17 + $0xe8] sm:$0xff] }
 0x378   :  { %1376 = vmatpush1.msra.mxu0 %v1138_v61  ;;  %v1517_v61 = vld [vmem:[#allocation17 + $0x2e8] sm:$0xff] }
 0x379   :  { %1377 = vmatprep.subr.mxu0 %v1135_v62  ;;  %v1452_v62 = vld [vmem:[#allocation17 + $0xe0] sm:$0xff] }
 0x37a   :  { %1378 = vmatpush1.msra.mxu0 %v1134_v63  ;;  %v1516_v63 = vld [vmem:[#allocation17 + $0x2e0] sm:$0xff] }
 0x37b   :  { %1379 = vmatprep.subr.mxu0 %v1131_v0  ;;  %v1451_v0 = vld [vmem:[#allocation17 + $0xd8] sm:$0xff] }
 0x37c   :  { %1380 = vmatpush1.msra.mxu0 %v1130_v1  ;;  %v1515_v1 = vld [vmem:[#allocation17 + $0x2d8] sm:$0xff] }
 0x37d   :  { %1381 = vmatprep.subr.mxu0 %v1255_v2  ;;  %v1450_v2 = vld [vmem:[#allocation17 + $0xd0] sm:$0xff] }
 0x37e   :  { %1382 = vmatpush2.msra.mxu0 %v1254_v3  ;;  %v1514_v3 = vld [vmem:[#allocation17 + $0x2d0] sm:$0xff] }
 0x37f   :  { %1383 = vmatprep.subr.mxu0 %v1251_v4  ;;  %v1449_v4 = vld [vmem:[#allocation17 + $0xc8] sm:$0xff] }
 0x380   :  { %1384 = vmatpush2.msra.mxu0 %v1250_v8  ;;  %v1513_v8 = vld [vmem:[#allocation17 + $0x2c8] sm:$0xff] }
 0x381   :  { %1385 = vmatprep.subr.mxu0 %v1247_v11  ;;  %v1448_v11 = vld [vmem:[#allocation17 + $0xc0] sm:$0xff] }
 0x382   :  { %1386 = vmatpush2.msra.mxu0 %v1246_v12  ;;  %v1512_v12 = vld [vmem:[#allocation17 + $0x2c0] sm:$0xff] }
 0x383   :  { %1387 = vmatprep.subr.mxu0 %v1243_v13  ;;  %v1447_v13 = vld [vmem:[#allocation17 + $0xb8] sm:$0xff] }
 0x384   :  { %1388 = vmatpush2.msra.mxu0 %v1242_v14  ;;  %v1511_v14 = vld [vmem:[#allocation17 + $0x2b8] sm:$0xff] }
 0x385   :  { %1389 = vmatprep.subr.mxu0 %v1239_v15  ;;  %v1446_v15 = vld [vmem:[#allocation17 + $0xb0] sm:$0xff] }
 0x386   :  { %1390 = vmatpush2.msra.mxu0 %v1238_v16  ;;  %v1510_v16 = vld [vmem:[#allocation17 + $0x2b0] sm:$0xff] }
 0x387   :  { %1391 = vmatprep.subr.mxu0 %v1235_v17  ;;  %v1445_v17 = vld [vmem:[#allocation17 + $0xa8] sm:$0xff] }
 0x388   :  { %1392 = vmatpush2.msra.mxu0 %v1234_v18  ;;  %v1509_v18 = vld [vmem:[#allocation17 + $0x2a8] sm:$0xff] }
 0x389   :  { %1393 = vmatprep.subr.mxu0 %v1231_v19  ;;  %v1444_v19 = vld [vmem:[#allocation17 + $0xa0] sm:$0xff] }
 0x38a   :  { %1394 = vmatpush2.msra.mxu0 %v1230_v20  ;;  %v1508_v20 = vld [vmem:[#allocation17 + $0x2a0] sm:$0xff] }
 0x38b   :  { %1395 = vmatprep.subr.mxu0 %v1227_v21  ;;  %v1443_v21 = vld [vmem:[#allocation17 + $0x98] sm:$0xff] }
 0x38c   :  { %1396 = vmatpush2.msra.mxu0 %v1226_v22  ;;  %v1507_v22 = vld [vmem:[#allocation17 + $0x298] sm:$0xff] }
 0x38d   :  { %1397 = vmatprep.subr.mxu0 %v1223_v23  ;;  %v1442_v23 = vld [vmem:[#allocation17 + $0x90] sm:$0xff] }
 0x38e   :  { %1398 = vmatpush2.msra.mxu0 %v1222_v24  ;;  %v1506_v24 = vld [vmem:[#allocation17 + $0x290] sm:$0xff] }
 0x38f   :  { %1399 = vmatprep.subr.mxu0 %v1219_v25  ;;  %v1441_v25 = vld [vmem:[#allocation17 + $0x88] sm:$0xff] }
 0x390   :  { %1400 = vmatpush2.msra.mxu0 %v1218_v26  ;;  %v1505_v26 = vld [vmem:[#allocation17 + $0x288] sm:$0xff] }
 0x391   :  { %1401 = vmatprep.subr.mxu0 %v1215_v27  ;;  %v1440_v27 = vld [vmem:[#allocation17 + $0x80] sm:$0xff] }
 0x392   :  { %1402 = vmatpush2.msra.mxu0 %v1214_v28  ;;  %v1504_v28 = vld [vmem:[#allocation17 + $0x280] sm:$0xff] }
 0x393   :  { %1403 = vmatprep.subr.mxu0 %v1211_v29  ;;  %v1439_v29 = vld [vmem:[#allocation17 + $0x78] sm:$0xff] }
 0x394   :  { %1404 = vmatpush2.msra.mxu0 %v1210_v30  ;;  %v1503_v30 = vld [vmem:[#allocation17 + $0x278] sm:$0xff] }
 0x395   :  { %1405 = vmatprep.subr.mxu0 %v1207_v32  ;;  %v1502_v32 = vld [vmem:[#allocation17 + $0x270] sm:$0xff] }
 0x396   :  { %1406 = vmatpush2.msra.mxu0 %v1206_v34  ;;  %v1501_v34 = vld [vmem:[#allocation17 + $0x268] sm:$0xff] }
 0x397   :  { %1407 = vmatprep.subr.mxu0 %v1203_v36  ;;  %v1500_v36 = vld [vmem:[#allocation17 + $0x260] sm:$0xff] }
 0x398   :  { %1408 = vmatpush2.msra.mxu0 %v1202_v38  ;;  %v1499_v38 = vld [vmem:[#allocation17 + $0x258] sm:$0xff] }
 0x399   :  { %1409 = vmatprep.subr.mxu0 %v1199_v40  ;;  %v1498_v40 = vld [vmem:[#allocation17 + $0x250] sm:$0xff] }
 0x39a   :  { %1410 = vmatpush2.msra.mxu0 %v1198_v42  ;;  %v1497_v42 = vld [vmem:[#allocation17 + $0x248] sm:$0xff] }
 0x39b   :  { %1411 = vmatprep.subr.mxu0 %v1195_v44  ;;  %v1496_v44 = vld [vmem:[#allocation17 + $0x240] sm:$0xff] }
 0x39c   :  { %1412 = vmatpush2.msra.mxu0 %v1194_v46  ;;  %v1495_v46 = vld [vmem:[#allocation17 + $0x238] sm:$0xff] }
 0x39d   :  { %1635 = vmatprep.subr.mxu0 %v1519_v48  ;;  %v1494_v48 = vld [vmem:[#allocation17 + $0x230] sm:$0xff] }
 0x41d   :  { %v1121_v52 = vpop.f32.mrf.mxu0 }
 0x41e   :  { %v1122_v53 = vadd.f32 %v1121_v52, %v1048_v50  ;;  %v1493_v50 = vld [vmem:[#allocation17 + $0x228] sm:$0xff]  ;;  %v1492_v52 = vld [vmem:[#allocation17 + $0x220] sm:$0xff] }
 0x41f   :  { %v1123_v54 = vpop.f32.mrf.mxu0 }
 0x420   :  { %v1124_v55 = vadd.f32 %v1123_v54, %v1052_v51  ;;  %v1126_v57 = vmax.f32 %v1122_v53, 0.0  ;;  %v1428_v51 = vld [vmem:[#allocation17 + $0x20] sm:$0xff]  ;;  %v1427_v53 = vld [vmem:[#allocation17 + $0x18] sm:$0xff] }
 0x421   :  { %v1491_v54 = vld [vmem:[#allocation17 + $0x218] sm:$0xff] }
 0x422   :  { %v1127_v56 = vmax.f32 %v1124_v55, 0.0  ;;  %v1426_v55 = vld [vmem:[#allocation17 + $0x10] sm:$0xff] }
 0x424   :  { %1342 = vmatprep.mubr.f32.mxu1 %v1127_v56  ;;  %1413 = vmatprep.mubr.f32.mxu0 %v1127_v56  ;;  %v1490_v56 = vld [vmem:[#allocation17 + $0x210] sm:$0xff] }
 0x425   :  { %1343 = vmatmul.mubr.f32.vlgmr.msra.gmra.mxu1 %v1126_v57  ;;  %1414 = vmatmul.mubr.f32.vlgmr.msra.gmra.mxu0 %v1126_v57  ;;  %v1425_v57 = vld [vmem:[#allocation17 + $0x8] sm:$0xff] }
 0x426   :  { %1565 = vmatpush1.msra.mxu1 %v1454_v58  ;;  %1636 = vmatpush1.msra.mxu0 %v1518_v59  ;;  %v1489_v58 = vld [vmem:[#allocation17 + $0x208] sm:$0xff]  ;;  %v1424_v59 = vld [vmem:[#allocation17] sm:$0xff] }
 0x427   :  { %1566 = vmatprep.subr.mxu1 %v1453_v60  ;;  %1637 = vmatprep.subr.mxu0 %v1517_v61  ;;  %v1488_v60 = vld [vmem:[#allocation17 + $0x200] sm:$0xff]  ;;  %v1487_v61 = vld [vmem:[#allocation17 + $0x1f8] sm:$0xff] }
 0x428   :  { %1567 = vmatpush1.msra.mxu1 %v1452_v62  ;;  %1638 = vmatpush1.msra.mxu0 %v1516_v63  ;;  %v1551_v62 = vld [vmem:[#allocation17 + $0x3f8] sm:$0xff]  ;;  %v1486_v63 = vld [vmem:[#allocation17 + $0x1f0] sm:$0xff] }
 0x429   :  { %1568 = vmatprep.subr.mxu1 %v1451_v0  ;;  %1639 = vmatprep.subr.mxu0 %v1515_v1  ;;  %v1550_v0 = vld [vmem:[#allocation17 + $0x3f0] sm:$0xff]  ;;  %v1485_v1 = vld [vmem:[#allocation17 + $0x1e8] sm:$0xff] }
 0x42a   :  { %1569 = vmatpush1.msra.mxu1 %v1450_v2  ;;  %1640 = vmatpush1.msra.mxu0 %v1514_v3  ;;  %v1549_v2 = vld [vmem:[#allocation17 + $0x3e8] sm:$0xff]  ;;  %v1484_v3 = vld [vmem:[#allocation17 + $0x1e0] sm:$0xff] }
 0x42b   :  { %1570 = vmatprep.subr.mxu1 %v1449_v4  ;;  %1641 = vmatprep.subr.mxu0 %v1513_v8  ;;  %v1548_v4 = vld [vmem:[#allocation17 + $0x3e0] sm:$0xff]  ;;  %v1483_v8 = vld [vmem:[#allocation17 + $0x1d8] sm:$0xff] }
 0x42c   :  { %1571 = vmatpush1.msra.mxu1 %v1448_v11  ;;  %1642 = vmatpush1.msra.mxu0 %v1512_v12  ;;  %v1547_v11 = vld [vmem:[#allocation17 + $0x3d8] sm:$0xff]  ;;  %v1482_v12 = vld [vmem:[#allocation17 + $0x1d0] sm:$0xff] }
 0x42d   :  { %1572 = vmatprep.subr.mxu1 %v1447_v13  ;;  %1643 = vmatprep.subr.mxu0 %v1511_v14  ;;  %v1546_v13 = vld [vmem:[#allocation17 + $0x3d0] sm:$0xff]  ;;  %v1481_v14 = vld [vmem:[#allocation17 + $0x1c8] sm:$0xff] }
 0x42e   :  { %1573 = vmatpush1.msra.mxu1 %v1446_v15  ;;  %1644 = vmatpush1.msra.mxu0 %v1510_v16  ;;  %v1545_v15 = vld [vmem:[#allocation17 + $0x3c8] sm:$0xff]  ;;  %v1480_v16 = vld [vmem:[#allocation17 + $0x1c0] sm:$0xff] }
 0x42f   :  { %1574 = vmatprep.subr.mxu1 %v1445_v17  ;;  %1645 = vmatprep.subr.mxu0 %v1509_v18  ;;  %v1544_v17 = vld [vmem:[#allocation17 + $0x3c0] sm:$0xff]  ;;  %v1479_v18 = vld [vmem:[#allocation17 + $0x1b8] sm:$0xff] }
 0x430   :  { %1575 = vmatpush1.msra.mxu1 %v1444_v19  ;;  %1646 = vmatpush1.msra.mxu0 %v1508_v20  ;;  %v1543_v19 = vld [vmem:[#allocation17 + $0x3b8] sm:$0xff]  ;;  %v1478_v20 = vld [vmem:[#allocation17 + $0x1b0] sm:$0xff] }
 0x431   :  { %1576 = vmatprep.subr.mxu1 %v1443_v21  ;;  %1647 = vmatprep.subr.mxu0 %v1507_v22  ;;  %v1542_v21 = vld [vmem:[#allocation17 + $0x3b0] sm:$0xff]  ;;  %v1477_v22 = vld [vmem:[#allocation17 + $0x1a8] sm:$0xff] }
 0x432   :  { %1577 = vmatpush1.msra.mxu1 %v1442_v23  ;;  %1648 = vmatpush1.msra.mxu0 %v1506_v24  ;;  %v1541_v23 = vld [vmem:[#allocation17 + $0x3a8] sm:$0xff]  ;;  %v1476_v24 = vld [vmem:[#allocation17 + $0x1a0] sm:$0xff] }
 0x433   :  { %1578 = vmatprep.subr.mxu1 %v1441_v25  ;;  %1649 = vmatprep.subr.mxu0 %v1505_v26  ;;  %v1540_v25 = vld [vmem:[#allocation17 + $0x3a0] sm:$0xff]  ;;  %v1475_v26 = vld [vmem:[#allocation17 + $0x198] sm:$0xff] }
 0x434   :  { %1579 = vmatpush1.msra.mxu1 %v1440_v27  ;;  %1650 = vmatpush1.msra.mxu0 %v1504_v28  ;;  %v1539_v27 = vld [vmem:[#allocation17 + $0x398] sm:$0xff]  ;;  %v1474_v28 = vld [vmem:[#allocation17 + $0x190] sm:$0xff] }
 0x435   :  { %1580 = vmatprep.subr.mxu1 %v1439_v29  ;;  %1651 = vmatprep.subr.mxu0 %v1503_v30  ;;  %v1538_v29 = vld [vmem:[#allocation17 + $0x390] sm:$0xff]  ;;  %v1473_v30 = vld [vmem:[#allocation17 + $0x188] sm:$0xff] }
 0x436   :  { %1581 = vmatpush1.msra.mxu1 %v1438_v31  ;;  %1652 = vmatpush1.msra.mxu0 %v1502_v32  ;;  %v1537_v31 = vld [vmem:[#allocation17 + $0x388] sm:$0xff]  ;;  %v1472_v32 = vld [vmem:[#allocation17 + $0x180] sm:$0xff] }
 0x437   :  { %1582 = vmatprep.subr.mxu1 %v1437_v33  ;;  %1653 = vmatprep.subr.mxu0 %v1501_v34  ;;  %v1536_v33 = vld [vmem:[#allocation17 + $0x380] sm:$0xff]  ;;  %v1471_v34 = vld [vmem:[#allocation17 + $0x178] sm:$0xff] }
 0x438   :  { %1583 = vmatpush1.msra.mxu1 %v1436_v35  ;;  %1654 = vmatpush1.msra.mxu0 %v1500_v36  ;;  %v1535_v35 = vld [vmem:[#allocation17 + $0x378] sm:$0xff]  ;;  %v1470_v36 = vld [vmem:[#allocation17 + $0x170] sm:$0xff] }
 0x439   :  { %1584 = vmatprep.subr.mxu1 %v1435_v37  ;;  %1655 = vmatprep.subr.mxu0 %v1499_v38  ;;  %v1534_v37 = vld [vmem:[#allocation17 + $0x370] sm:$0xff]  ;;  %v1469_v38 = vld [vmem:[#allocation17 + $0x168] sm:$0xff] }
 0x43a   :  { %1585 = vmatpush1.msra.mxu1 %v1434_v39  ;;  %1656 = vmatpush1.msra.mxu0 %v1498_v40  ;;  %v1533_v39 = vld [vmem:[#allocation17 + $0x368] sm:$0xff]  ;;  %v1468_v40 = vld [vmem:[#allocation17 + $0x160] sm:$0xff] }
 0x43b   :  { %1586 = vmatprep.subr.mxu1 %v1433_v41  ;;  %1657 = vmatprep.subr.mxu0 %v1497_v42  ;;  %v1532_v41 = vld [vmem:[#allocation17 + $0x360] sm:$0xff]  ;;  %v1467_v42 = vld [vmem:[#allocation17 + $0x158] sm:$0xff] }
 0x43c   :  { %1587 = vmatpush1.msra.mxu1 %v1432_v43  ;;  %1658 = vmatpush1.msra.mxu0 %v1496_v44  ;;  %v1531_v43 = vld [vmem:[#allocation17 + $0x358] sm:$0xff]  ;;  %v1466_v44 = vld [vmem:[#allocation17 + $0x150] sm:$0xff] }
 0x43d   :  { %1588 = vmatprep.subr.mxu1 %v1431_v45  ;;  %1659 = vmatprep.subr.mxu0 %v1495_v46  ;;  %v1530_v45 = vld [vmem:[#allocation17 + $0x350] sm:$0xff]  ;;  %v1465_v46 = vld [vmem:[#allocation17 + $0x148] sm:$0xff] }
 0x43e   :  { %1589 = vmatpush1.msra.mxu1 %v1430_v47  ;;  %1660 = vmatpush1.msra.mxu0 %v1494_v48  ;;  %v1529_v47 = vld [vmem:[#allocation17 + $0x348] sm:$0xff]  ;;  %v1464_v48 = vld [vmem:[#allocation17 + $0x140] sm:$0xff] }
 0x43f   :  { %1590 = vmatprep.subr.mxu1 %v1429_v49  ;;  %1661 = vmatprep.subr.mxu0 %v1493_v50  ;;  %v1528_v49 = vld [vmem:[#allocation17 + $0x340] sm:$0xff]  ;;  %v1463_v50 = vld [vmem:[#allocation17 + $0x138] sm:$0xff] }
 0x440   :  { %1591 = vmatpush1.msra.mxu1 %v1428_v51  ;;  %1662 = vmatpush1.msra.mxu0 %v1492_v52  ;;  %v1527_v51 = vld [vmem:[#allocation17 + $0x338] sm:$0xff]  ;;  %v1462_v52 = vld [vmem:[#allocation17 + $0x130] sm:$0xff] }
 0x441   :  { %1592 = vmatprep.subr.mxu1 %v1427_v53  ;;  %1663 = vmatprep.subr.mxu0 %v1491_v54  ;;  %v1526_v53 = vld [vmem:[#allocation17 + $0x330] sm:$0xff]  ;;  %v1461_v54 = vld [vmem:[#allocation17 + $0x128] sm:$0xff] }
 0x442   :  { %1593 = vmatpush1.msra.mxu1 %v1426_v55  ;;  %1664 = vmatpush1.msra.mxu0 %v1490_v56  ;;  %v1525_v55 = vld [vmem:[#allocation17 + $0x328] sm:$0xff]  ;;  %v1460_v56 = vld [vmem:[#allocation17 + $0x120] sm:$0xff] }
 0x443   :  { %1594 = vmatprep.subr.mxu1 %v1425_v57  ;;  %1665 = vmatprep.subr.mxu0 %v1489_v58  ;;  %v1524_v57 = vld [vmem:[#allocation17 + $0x320] sm:$0xff]  ;;  %v1459_v58 = vld [vmem:[#allocation17 + $0x118] sm:$0xff] }
 0x444   :  { %1595 = vmatpush1.msra.mxu1 %v1424_v59  ;;  %1666 = vmatpush1.msra.mxu0 %v1488_v60  ;;  %v1523_v59 = vld [vmem:[#allocation17 + $0x318] sm:$0xff]  ;;  %v1458_v60 = vld [vmem:[#allocation17 + $0x110] sm:$0xff] }
 0x445   :  { %1596 = vmatprep.subr.mxu1 %v1487_v61  ;;  %1667 = vmatprep.subr.mxu0 %v1551_v62  ;;  %v1522_v61 = vld [vmem:[#allocation17 + $0x310] sm:$0xff]  ;;  %v1457_v62 = vld [vmem:[#allocation17 + $0x108] sm:$0xff] }
 0x446   :  { %1597 = vmatpush2.msra.mxu1 %v1486_v63  ;;  %1668 = vmatpush2.msra.mxu0 %v1550_v0  ;;  %v1521_v63 = vld [vmem:[#allocation17 + $0x308] sm:$0xff]  ;;  %v1456_v0 = vld [vmem:[#allocation17 + $0x100] sm:$0xff] }
 0x447   :  { %1598 = vmatprep.subr.mxu1 %v1485_v1  ;;  %1669 = vmatprep.subr.mxu0 %v1549_v2  ;;  %v1520_v1 = vld [vmem:[#allocation17 + $0x300] sm:$0xff]  ;;  %v1256_v2 = vld [vmem:[%s2387_s13] sm:$0xf]  ;;  %s2173_s13 = smov [#allocation21]  }
 0x448   :  { %1599 = vmatpush2.msra.mxu1 %v1484_v3  ;;  %1670 = vmatpush2.msra.mxu0 %v1548_v4  ;;  %v1261_v3 = vrot.slane %v1256_v2, %v2329_v7  ;;  %v1269_v4 = vrot.slane %v1256_v2, %v341_v6  ;;  %s1728_s4 = sshll.u32 %s2173_s13, 4  ;;  %s1729_s4 = int_to_ptr.vmem [resolvable:$true] %s1728_s4 }
 0x449   :  { %1600 = vmatprep.subr.mxu1 %v1483_v8  ;;  %1671 = vmatprep.subr.mxu0 %v1547_v11  ;;  %v1265_v8 = vrot.slane %v1256_v2, %v2335_v9  ;;  %v1273_v11 = vrot.slane %v1256_v2, %v345_v10  ;;  %s2079_s28 = scalar_lea.vmem %s1729_s4, 128  ;;  %p2084_p0 = scmp.lt.s32.totalorder %s1729_s4, %s1729_s4 }
 0x44a   :  { %1601 = vmatpush2.msra.mxu1 %v1482_v12  ;;  %1672 = vmatpush2.msra.mxu0 %v1546_v13  ;;  %p2080_p13 = scmp.ne.s32.totalorder %s1729_s4, %s2079_s28  ;;  %p2085_p1 = scmp.lt.s32.totalorder %s2079_s28, %s2079_s28 }
 0x44b   :  { %1602 = vmatprep.subr.mxu1 %v1481_v14  ;;  %1673 = vmatprep.subr.mxu0 %v1545_v15 }
 0x44c   :  { %1603 = vmatpush2.msra.mxu1 %v1480_v16  ;;  %1674 = vmatpush2.msra.mxu0 %v1544_v17  ;;  %p2086_p2 = por %p2085_p1, %p2084_p0 }
 0x44d   :  { %1604 = vmatprep.subr.mxu1 %v1479_v18  ;;  %1675 = vmatprep.subr.mxu0 %v1543_v19 }
 0x44e   :  { %1605 = vmatpush2.msra.mxu1 %v1478_v20  ;;  %1676 = vmatpush2.msra.mxu0 %v1542_v21  ;;  %p2087_p3 = pnand %p2086_p2, %p2080_p13 }
 0x44f   :  { %1606 = vmatprep.subr.mxu1 %v1477_v22  ;;  %1677 = vmatprep.subr.mxu0 %v1541_v23 }
 0x450   :  { %1607 = vmatpush2.msra.mxu1 %v1476_v24  ;;  %1678 = vmatpush2.msra.mxu0 %v1540_v25 }
 0x451   :  { %1608 = vmatprep.subr.mxu1 %v1475_v26  ;;  %1679 = vmatprep.subr.mxu0 %v1539_v27 }
 0x452   :  { %1609 = vmatpush2.msra.mxu1 %v1474_v28  ;;  %1680 = vmatpush2.msra.mxu0 %v1538_v29 }
 0x453   :  { %1610 = vmatprep.subr.mxu1 %v1473_v30  ;;  %1681 = vmatprep.subr.mxu0 %v1537_v31 }
 0x454   :  { %1611 = vmatpush2.msra.mxu1 %v1472_v32  ;;  %1682 = vmatpush2.msra.mxu0 %v1536_v33 }
 0x455   :  { %1612 = vmatprep.subr.mxu1 %v1471_v34  ;;  %1683 = vmatprep.subr.mxu0 %v1535_v35 }
 0x456   :  { %1613 = vmatpush2.msra.mxu1 %v1470_v36  ;;  %1684 = vmatpush2.msra.mxu0 %v1534_v37 }
 0x457   :  { %1614 = vmatprep.subr.mxu1 %v1469_v38  ;;  %1685 = vmatprep.subr.mxu0 %v1533_v39 }
 0x458   :  { %1615 = vmatpush2.msra.mxu1 %v1468_v40  ;;  %1686 = vmatpush2.msra.mxu0 %v1532_v41 }
 0x459   :  { %1616 = vmatprep.subr.mxu1 %v1467_v42  ;;  %1687 = vmatprep.subr.mxu0 %v1531_v43 }
 0x45a   :  { %1617 = vmatpush2.msra.mxu1 %v1466_v44  ;;  %1688 = vmatpush2.msra.mxu0 %v1530_v45 }
 0x45b   :  { %1618 = vmatprep.subr.mxu1 %v1465_v46  ;;  %1689 = vmatprep.subr.mxu0 %v1529_v47 }
 0x45c   :  { %1619 = vmatpush2.msra.mxu1 %v1464_v48  ;;  %1690 = vmatpush2.msra.mxu0 %v1528_v49 }
 0x45d   :  { %1620 = vmatprep.subr.mxu1 %v1463_v50  ;;  %1691 = vmatprep.subr.mxu0 %v1527_v51 }
 0x45e   :  { %1621 = vmatpush2.msra.mxu1 %v1462_v52  ;;  %1692 = vmatpush2.msra.mxu0 %v1526_v53 }
 0x45f   :  { %1622 = vmatprep.subr.mxu1 %v1461_v54  ;;  %1693 = vmatprep.subr.mxu0 %v1525_v55 }
 0x460   :  { %1623 = vmatpush2.msra.mxu1 %v1460_v56  ;;  %1694 = vmatpush2.msra.mxu0 %v1524_v57 }
 0x461   :  { %1624 = vmatprep.subr.mxu1 %v1459_v58  ;;  %1695 = vmatprep.subr.mxu0 %v1523_v59 }
 0x462   :  { %1625 = vmatpush2.msra.mxu1 %v1458_v60  ;;  %1696 = vmatpush2.msra.mxu0 %v1522_v61 }
 0x463   :  { %1626 = vmatprep.subr.mxu1 %v1457_v62  ;;  %1697 = vmatprep.subr.mxu0 %v1521_v63 }
 0x464   :  { %1627 = vmatpush2.msra.mxu1 %v1456_v0  ;;  %1698 = vmatpush2.msra.mxu0 %v1520_v1 }
 0x4e5   :  { %v1344_v12 = vpop.f32.mrf.mxu1  ;;  %v1415_v13 = vpop.f32.mrf.mxu0 }
 0x4e6   :  { %v1345_v14 = vadd.f32 %v1344_v12, %v1261_v3  ;;  %v1416_v15 = vadd.f32 %v1415_v13, %v1269_v4 }
 0x4e7   :  { %v1346_v16 = vpop.f32.mrf.mxu1  ;;  %v1417_v17 = vpop.f32.mrf.mxu0 }
 0x4e8   :  { %v1347_v18 = vadd.f32 %v1346_v16, %v1265_v8  ;;  %v1418_v19 = vadd.f32 %v1417_v17, %v1273_v11  ;;  %v1420_v22 = vmax.f32 %v1345_v14, 0.0  ;;  %v1422_v23 = vmax.f32 %v1416_v15, 0.0 }
 0x4ea   :  { %v1421_v20 = vmax.f32 %v1347_v18, 0.0  ;;  %v1423_v21 = vmax.f32 %v1418_v19, 0.0 }
 0x4ec   :  { %1628 = vmatprep.mubr.f32.mxu1 %v1421_v20  ;;  %1699 = vmatprep.mubr.f32.mxu0 %v1423_v21 }
 0x4ed   :  { %1629 = vmatmul.mubr.f32.vlgmr.msra.gmra.mxu1 %v1420_v22  ;;  %1700 = vmatmul.mubr.f32.vlgmr.msra.gmra.mxu0 %v1422_v23 }
 0x4ee   :  { %2090 = shalt.err (!%p2087_p3)
}
 0x4ef   :  { %1731 = dma.vmem_to_hbm [thread:$0]  %s1729_s4, 128, %s2391_s17, [#allocation22]  }
 0x4f0   :  { %s2174_s1 = smov [#allocation23]  }
 0x4f1   :  { %s1738_s7 = sshll.u32 %s2174_s1, 4  ;;  %s1739_s7 = int_to_ptr.vmem [resolvable:$true] %s1738_s7 }
 0x4f2   :  { %s2099_s20 = scalar_lea.vmem %s1739_s7, 128  ;;  %p2104_p5 = scmp.lt.s32.totalorder %s1739_s7, %s1739_s7 }
 0x4f3   :  { %p2100_p4 = scmp.ne.s32.totalorder %s1739_s7, %s2099_s20  ;;  %p2105_p6 = scmp.lt.s32.totalorder %s2099_s20, %s2099_s20 }
 0x4f5   :  { %p2106_p7 = por %p2105_p6, %p2104_p5 }
 0x4f7   :  { %p2107_p8 = pnand %p2106_p7, %p2100_p4 }
 0x4f9   :  { %2110 = shalt.err (!%p2107_p8)
}
 0x4fa   :  { %1741 = dma.vmem_to_hbm [thread:$0]  %s1739_s7, 128, %s2392_s18, [#allocation22]   ;;  %v1552_v5 = vld [vmem:[#allocation19] sm:$0x3] }
 0x4fb   :  { %v1557_v6 = vrot.slane %v1552_v5, %v2329_v7  ;;  %v1561_v10 = vrot.slane %v1552_v5, %v2335_v9  ;;  %s2175_s17 = smov [#allocation20]  }
 0x4fc   :  { %s1718_s21 = sshll.u32 %s2175_s17, 4  ;;  %s1719_s21 = int_to_ptr.vmem [resolvable:$true] %s1718_s21 }
 0x4fd   :  { %s2119_s18 = scalar_lea.vmem %s1719_s21, 256  ;;  %p2124_p10 = scmp.lt.s32.totalorder %s1719_s21, %s1719_s21 }
 0x4fe   :  { %p2120_p9 = scmp.ne.s32.totalorder %s1719_s21, %s2119_s18  ;;  %p2125_p11 = scmp.lt.s32.totalorder %s2119_s18, %s2119_s18 }
 0x500   :  { %p2126_p12 = por %p2125_p11, %p2124_p10 }
 0x502   :  { %p2127_p13 = pnand %p2126_p12, %p2120_p9 }
 0x5ad   :  { %v1630_v24 = vpop.f32.mrf.mxu1  ;;  %v1701_v25 = vpop.f32.mrf.mxu0 }
 0x5ae   :  { %v1631_v26 = vadd.f32 %v1630_v24, %v1557_v6 }
 0x5af   :  { %v1632_v27 = vpop.f32.mrf.mxu1  ;;  %v1703_v30 = vpop.f32.mrf.mxu0 }
 0x5b0   :  { %v1702_v28 = vadd.f32 %v1701_v25, %v1631_v26  ;;  %v1633_v29 = vadd.f32 %v1632_v27, %v1561_v10 }
 0x5b2   :  { %v1706_v31 = vmax.f32 %v1702_v28, 0.0  ;;  %v1704_v32 = vadd.f32 %v1703_v30, %v1633_v29 }
 0x5b4   :  { %1708 = vst [vmem:[#allocation20] sm:$0xff] %v1706_v31  ;;  %v1707_v33 = vmax.f32 %v1704_v32, 0.0 }
 0x5b6   :  { %1709 = vst [vmem:[#allocation20 + $0x8] sm:$0xff] %v1707_v33 }
 0x5b7   :  { %2130 = shalt.err (!%p2127_p13)
}
 0x5b8   :  { %1721 = dma.vmem_to_hbm [thread:$0]  %s1719_s21, 256, %s2390_s16, [#allocation4]  }
 0x5b9   :  { %2151 = dma.done.wait [#allocation4], 256  }
 0x5ba   :  { %2152 = vsyncadd [#allocation4], 4294967040 }
 0x5bb   :  { %2153 = dma.done.wait [#allocation22], 256  }
 0x5bc   :  { %2154 = vsyncadd [#allocation22], 4294967040 }
 0x5bd   :  { %1751 = vsyncpa [#allocation3], 1 }
 0x5be   :  { %1752 = vsyncpa [#allocation6], 1 }
 0x5bf   :  { %1753 = vsyncpa [#allocation9], 1 }
 0x5c0   :  { %1754 = vsyncpa [#allocation12], 1 }
 0x5c1   :  { %1755 = vsyncpa [#allocation15], 1 }
 0x5c2   :  { %1756 = vsyncpa [#allocation18], 1 }
 0x5c3   :  { %1757 = vsyncpa [#allocation4], 1 }
 0x5c4   :  { %1758 = vsyncpa [#allocation22], 1 }

</bundles_post_ra>
